<compile_context>
chip_gen: v5e
topology: v5e:2x2
jax: 0.10.0
libtpu: 0.0.40
codegen_flags: <defaults>
</compile_context>

<pallas_src>
import jax
import jax.numpy as jnp
from jax import lax
from jax.experimental import pallas as pl
from jax.experimental.pallas import tpu as pltpu


def encoder_gru_kernel(emb2d_ref, mask_ref,
                       wih_f_ref, whh_f_ref, bgi_f_ref, bhn_f_ref,
                       wih_b_ref, whh_b_ref, bgi_b_ref, bhn_b_ref,
                       wfc_ref, bfc_ref,
                       out_ref, hid_ref,
                       gif_sc, gib_sc, accf_sc, accb_sc):
    T, B, H = out_ref.shape

    # ---- hoisted input projections: one big MXU matmul per direction ----
    # gi = emb @ W_ih + (b_ih + [b_hh_r, b_hh_z, 0])  -> (T*B, 3H)
    emb2d = emb2d_ref[...]
    gif_sc[...] = (jnp.dot(emb2d, wih_f_ref[...],
                           preferred_element_type=jnp.float32) + bgi_f_ref[...])
    gib_sc[...] = (jnp.dot(emb2d, wih_b_ref[...],
                           preferred_element_type=jnp.float32) + bgi_b_ref[...])

    whh_f = whh_f_ref[...]
    whh_b = whh_b_ref[...]
    bhn_f = bhn_f_ref[...]
    bhn_b = bhn_b_ref[...]

    def cell(gi, h, whh, bhn):
        # torch.nn.GRU cell, gate order [r, z, n]; b_ih and b_hh(r,z) already folded
        # into gi, only b_hh_n is applied here.
        gh = jnp.dot(h, whh, preferred_element_type=jnp.float32)          # (B, 3H)
        r = jax.nn.sigmoid(gi[:, 0 * H:1 * H] + gh[:, 0 * H:1 * H])
        z = jax.nn.sigmoid(gi[:, 1 * H:2 * H] + gh[:, 1 * H:2 * H])
        n = jnp.tanh(gi[:, 2 * H:3 * H] + r * (gh[:, 2 * H:3 * H] + bhn))
        return n + z * (h - n)                                            # (1-z)*n + z*h

    h_f = jnp.zeros((B, H), jnp.float32)
    h_b = jnp.zeros((B, H), jnp.float32)

    # ---- single fully-unrolled loop; fwd and bwd recurrences interleaved for ILP ----
    # Packed-sequence semantics: hidden is frozen past each sequence's length; the
    # output mask is applied once, in bulk, after the loop.
    for i in range(T):
        tf = i              # forward time step
        tb = T - 1 - i      # backward time step

        gi_f = gif_sc[pl.ds(tf * B, B), :]                                # (B, 3H)
        gi_b = gib_sc[pl.ds(tb * B, B), :]
        m_f = mask_ref[tf]                                                # (B, H)
        m_b = mask_ref[tb]

        hf_new = cell(gi_f, h_f, whh_f, bhn_f)
        hb_new = cell(gi_b, h_b, whh_b, bhn_b)

        h_f = h_f + m_f * (hf_new - h_f)     # update if t < len, else frozen
        h_b = h_b + m_b * (hb_new - h_b)

        accf_sc[tf] = h_f
        accb_sc[tb] = h_b

    # ---- one bulk, masked write of the summed bidirectional outputs ----
    out_ref[...] = mask_ref[...] * (accf_sc[...] + accb_sc[...])

    # ---- hidden = tanh(fc(cat(h_fwd, h_bwd))) ----
    cat = jnp.concatenate([h_f, h_b], axis=1)                             # (B, 2H)
    hid_ref[...] = jnp.tanh(
        jnp.dot(cat, wfc_ref[...], preferred_element_type=jnp.float32) + bfc_ref[...]
    )


@jax.jit
def encoder_rnn_forward(input_seq, input_lengths, params):
    """input_seq: (T, B) int32; input_lengths: (B,) int32 (sorted descending)."""
    T, B = input_seq.shape
    H = params["embedding"].shape[1]

    # Glue: embedding gather + dropout (eval mode => identity).
    # TODO(synk): training-mode dropout with RNG is not implemented (eval semantics used).
    embedded = jnp.take(params["embedding"], input_seq, axis=0).astype(jnp.float32)  # (T, B, H)
    emb2d = embedded.reshape(T * B, H)

    # Packed-sequence validity mask, precomputed once (T, B, H).
    lengths = input_lengths.astype(jnp.int32)
    mask = (jnp.arange(T, dtype=jnp.int32)[:, None] < lengths[None, :]).astype(jnp.float32)
    mask = jnp.broadcast_to(mask[:, :, None], (T, B, H))

    # Fold b_ih + b_hh into the hoisted input projection for the r/z gates;
    # keep b_hh_n separate (it is gated by r inside the recurrence).
    def fold(bih, bhh):
        bgi = bih + jnp.concatenate(
            [bhh[:, :2 * H], jnp.zeros((1, H), jnp.float32)], axis=1)
        bhn = bhh[:, 2 * H:]
        return bgi, bhn

    bgi_f, bhn_f = fold(params["bih_f"], params["bhh_f"])
    bgi_b, bhn_b = fold(params["bih_b"], params["bhh_b"])

    vmem = pl.BlockSpec(memory_space=pltpu.MemorySpace.VMEM)
    outputs, hidden = pl.pallas_call(
        encoder_gru_kernel,
        out_shape=(
            jax.ShapeDtypeStruct((T, B, H), jnp.float32),   # summed bidirectional outputs
            jax.ShapeDtypeStruct((B, H), jnp.float32),      # tanh(fc(cat(h_f, h_b)))
        ),
        in_specs=[vmem] * 12,
        out_specs=(vmem, vmem),
        scratch_shapes=[
            pltpu.VMEM((T * B, 3 * H), jnp.float32),        # hoisted gi, forward
            pltpu.VMEM((T * B, 3 * H), jnp.float32),        # hoisted gi, backward
            pltpu.VMEM((T, B, H), jnp.float32),             # per-step fwd hidden states
            pltpu.VMEM((T, B, H), jnp.float32),             # per-step bwd hidden states
        ],
    )(
        emb2d, mask,
        params["wih_f"], params["whh_f"], bgi_f, bhn_f,
        params["wih_b"], params["whh_b"], bgi_b, bhn_b,
        params["wfc"], params["bfc"],
    )
    return outputs, hidden


# ---------------- pure-JAX reference (mirrors torch packed-GRU semantics) ----------------
def reference_forward(input_seq, input_lengths, params):
    T, B = input_seq.shape
    H = params["embedding"].shape[1]
    emb = jnp.take(params["embedding"], input_seq, axis=0).astype(jnp.float32)
    lengths = input_lengths.astype(jnp.int32).reshape(B, 1)

    def gru_step(x, h, wih, whh, bih, bhh):
        gi = x @ wih + bih
        gh = h @ whh + bhh
        r = jax.nn.sigmoid(gi[:, :H] + gh[:, :H])
        z = jax.nn.sigmoid(gi[:, H:2 * H] + gh[:, H:2 * H])
        n = jnp.tanh(gi[:, 2 * H:] + r * gh[:, 2 * H:])
        return (1.0 - z) * n + z * h

    out = jnp.zeros((T, B, H), jnp.float32)
    h = jnp.zeros((B, H), jnp.float32)
    for t in range(T):
        h_new = gru_step(emb[t], h, params["wih_f"], params["whh_f"],
                         params["bih_f"], params["bhh_f"])
        m = (t < lengths).astype(jnp.float32)
        out = out.at[t].add(m * h_new)
        h = m * h_new + (1.0 - m) * h
    h_f = h
    h = jnp.zeros((B, H), jnp.float32)
    for t in range(T - 1, -1, -1):
        h_new = gru_step(emb[t], h, params["wih_b"], params["whh_b"],
                         params["bih_b"], params["bhh_b"])
        m = (t < lengths).astype(jnp.float32)
        out = out.at[t].add(m * h_new)
        h = m * h_new + (1.0 - m) * h
    h_b = h
    hid = jnp.tanh(jnp.concatenate([h_f, h_b], axis=1) @ params["wfc"] + params["bfc"])
    return out, hid


def init_params(key, input_size, hidden_size):
    H = hidden_size
    ks = jax.random.split(key, 11)
    s = 0.1
    p = {
        "embedding": jax.random.normal(ks[0], (input_size, H), jnp.float32) * s,
        # GRU weights stored pre-transposed as (in, 3H); gate order [r, z, n].
        "wih_f": jax.random.normal(ks[1], (H, 3 * H), jnp.float32) * s,
        "whh_f": jax.random.normal(ks[2], (H, 3 * H), jnp.float32) * s,
        "bih_f": jax.random.normal(ks[3], (1, 3 * H), jnp.float32) * s,
        "bhh_f": jax.random.normal(ks[4], (1, 3 * H), jnp.float32) * s,
        "wih_b": jax.random.normal(ks[5], (H, 3 * H), jnp.float32) * s,
        "whh_b": jax.random.normal(ks[6], (H, 3 * H), jnp.float32) * s,
        "bih_b": jax.random.normal(ks[7], (1, 3 * H), jnp.float32) * s,
        "bhh_b": jax.random.normal(ks[8], (1, 3 * H), jnp.float32) * s,
        # fc: torch Linear(2H -> H); stored transposed as (2H, H).
        "wfc": jax.random.normal(ks[9], (2 * H, H), jnp.float32) * s,
        "bfc": jax.random.normal(ks[10], (1, H), jnp.float32) * s,
    }
    return p


if __name__ == "__main__":
    key = jax.random.PRNGKey(0)
    input_size = 50      # vocab size
    hidden_size = 32
    T, B = 8, 4

    k_tok, k_par = jax.random.split(key)
    input_seq = jax.random.randint(k_tok, (T, B), 0, input_size, dtype=jnp.int32)
    input_lengths = jnp.array([8, 6, 5, 3], dtype=jnp.int32)  # sorted descending (pack_padded)
    params = init_params(k_par, input_size, hidden_size)

    outputs, hidden = encoder_rnn_forward(input_seq, input_lengths, params)
    jax.block_until_ready((outputs, hidden))

    ref_out, ref_hid = reference_forward(input_seq, input_lengths, params)
    assert jnp.allclose(outputs, ref_out, atol=1e-5, rtol=1e-5), "outputs mismatch"
    assert jnp.allclose(hidden, ref_hid, atol=1e-5, rtol=1e-5), "hidden mismatch"

    print("KERNEL_OK")
</pallas_src>

<mosaic_0001>
module attributes {stable_mosaic.version = 11 : i64} {
  func.func @encoder_gru_kernel(%arg0: memref<32x32xf32, #tpu.memory_space<vmem>>, %arg1: memref<8x4x32xf32, #tpu.memory_space<vmem>>, %arg2: memref<32x96xf32, #tpu.memory_space<vmem>>, %arg3: memref<32x96xf32, #tpu.memory_space<vmem>>, %arg4: memref<1x96xf32, #tpu.memory_space<vmem>>, %arg5: memref<1x32xf32, #tpu.memory_space<vmem>>, %arg6: memref<32x96xf32, #tpu.memory_space<vmem>>, %arg7: memref<32x96xf32, #tpu.memory_space<vmem>>, %arg8: memref<1x96xf32, #tpu.memory_space<vmem>>, %arg9: memref<1x32xf32, #tpu.memory_space<vmem>>, %arg10: memref<64x32xf32, #tpu.memory_space<vmem>>, %arg11: memref<1x32xf32, #tpu.memory_space<vmem>>, %arg12: memref<8x4x32xf32, #tpu.memory_space<vmem>>, %arg13: memref<4x32xf32, #tpu.memory_space<vmem>>, %arg14: memref<32x96xf32, #tpu.memory_space<vmem>>, %arg15: memref<32x96xf32, #tpu.memory_space<vmem>>, %arg16: memref<8x4x32xf32, #tpu.memory_space<vmem>>, %arg17: memref<8x4x32xf32, #tpu.memory_space<vmem>>) attributes {dimension_semantics = [], scalar_prefetch = 0 : i64, scratch_operands = 4 : i64, tpu.core_type = #tpu.core_type<tc>} {
    %c0 = arith.constant 0 : index
    %c0_0 = arith.constant 0 : index
    %0 = vector.load %arg0[%c0, %c0_0] : memref<32x32xf32, #tpu.memory_space<vmem>>, vector<32x32xf32>
    %c0_1 = arith.constant 0 : index
    %c0_2 = arith.constant 0 : index
    %1 = vector.load %arg2[%c0_1, %c0_2] : memref<32x96xf32, #tpu.memory_space<vmem>>, vector<32x96xf32>
    %cst = arith.constant dense<0.000000e+00> : vector<32x96xf32>
    %2 = tpu.matmul %0, %1, %cst {dimension_numbers = #tpu.dot_dimension_numbers<[1], [0], [0], [1], [0, 0, 1, 1], [], []>} : vector<32x32xf32>, vector<32x96xf32>, vector<32x96xf32> -> vector<32x96xf32>
    %c0_3 = arith.constant 0 : index
    %c0_4 = arith.constant 0 : index
    %3 = vector.load %arg4[%c0_3, %c0_4] : memref<1x96xf32, #tpu.memory_space<vmem>>, vector<1x96xf32>
    %4 = vector.broadcast %3 : vector<1x96xf32> to vector<32x96xf32>
    %5 = arith.addf %2, %4 : vector<32x96xf32>
    %c0_5 = arith.constant 0 : index
    %c0_6 = arith.constant 0 : index
    %6 = vector.load %arg14[%c0_5, %c0_6] : memref<32x96xf32, #tpu.memory_space<vmem>>, vector<32x96xf32>
    tpu.vector_store %arg14[%c0_5, %c0_6], %5 {strides = array<i32>} : memref<32x96xf32, #tpu.memory_space<vmem>>, vector<32x96xf32>,
    %c0_7 = arith.constant 0 : index
    %c0_8 = arith.constant 0 : index
    %7 = vector.load %arg6[%c0_7, %c0_8] : memref<32x96xf32, #tpu.memory_space<vmem>>, vector<32x96xf32>
    %cst_9 = arith.constant dense<0.000000e+00> : vector<32x96xf32>
    %8 = tpu.matmul %0, %7, %cst_9 {dimension_numbers = #tpu.dot_dimension_numbers<[1], [0], [0], [1], [0, 0, 1, 1], [], []>} : vector<32x32xf32>, vector<32x96xf32>, vector<32x96xf32> -> vector<32x96xf32>
    %c0_10 = arith.constant 0 : index
    %c0_11 = arith.constant 0 : index
    %9 = vector.load %arg8[%c0_10, %c0_11] : memref<1x96xf32, #tpu.memory_space<vmem>>, vector<1x96xf32>
    %10 = vector.broadcast %9 : vector<1x96xf32> to vector<32x96xf32>
    %11 = arith.addf %8, %10 : vector<32x96xf32>
    %c0_12 = arith.constant 0 : index
    %c0_13 = arith.constant 0 : index
    %12 = vector.load %arg15[%c0_12, %c0_13] : memref<32x96xf32, #tpu.memory_space<vmem>>, vector<32x96xf32>
    tpu.vector_store %arg15[%c0_12, %c0_13], %11 {strides = array<i32>} : memref<32x96xf32, #tpu.memory_space<vmem>>, vector<32x96xf32>,
    %c0_14 = arith.constant 0 : index
    %c0_15 = arith.constant 0 : index
    %13 = vector.load %arg3[%c0_14, %c0_15] : memref<32x96xf32, #tpu.memory_space<vmem>>, vector<32x96xf32>
    %c0_16 = arith.constant 0 : index
    %c0_17 = arith.constant 0 : index
    %14 = vector.load %arg7[%c0_16, %c0_17] : memref<32x96xf32, #tpu.memory_space<vmem>>, vector<32x96xf32>
    %c0_18 = arith.constant 0 : index
    %c0_19 = arith.constant 0 : index
    %15 = vector.load %arg5[%c0_18, %c0_19] : memref<1x32xf32, #tpu.memory_space<vmem>>, vector<1x32xf32>
    %c0_20 = arith.constant 0 : index
    %c0_21 = arith.constant 0 : index
    %16 = vector.load %arg9[%c0_20, %c0_21] : memref<1x32xf32, #tpu.memory_space<vmem>>, vector<1x32xf32>
    %cst_22 = arith.constant 0.000000e+00 : f32
    %17 = vector.broadcast %cst_22 : f32 to vector<4x32xf32>
    %cst_23 = arith.constant 0.000000e+00 : f32
    %18 = vector.broadcast %cst_23 : f32 to vector<4x32xf32>
    %c0_24 = arith.constant 0 : index
    %c0_25 = arith.constant 0 : index
    %19 = vector.load %arg14[%c0_24, %c0_25] : memref<32x96xf32, #tpu.memory_space<vmem>>, vector<4x96xf32>
    %c28 = arith.constant 28 : index
    %c0_26 = arith.constant 0 : index
    %20 = vector.load %arg15[%c28, %c0_26] : memref<32x96xf32, #tpu.memory_space<vmem>>, vector<4x96xf32>
    %c0_27 = arith.constant 0 : index
    %c0_28 = arith.constant 0 : index
    %c0_29 = arith.constant 0 : index
    %21 = vector.load %arg1[%c0_27, %c0_28, %c0_29] : memref<8x4x32xf32, #tpu.memory_space<vmem>>, vector<1x4x32xf32>
    %22 = vector.shape_cast %21 : vector<1x4x32xf32> to vector<4x32xf32>
    %c7 = arith.constant 7 : index
    %c0_30 = arith.constant 0 : index
    %c0_31 = arith.constant 0 : index
    %23 = vector.load %arg1[%c7, %c0_30, %c0_31] : memref<8x4x32xf32, #tpu.memory_space<vmem>>, vector<1x4x32xf32>
    %24 = vector.shape_cast %23 : vector<1x4x32xf32> to vector<4x32xf32>
    %cst_32 = arith.constant dense<0.000000e+00> : vector<4x96xf32>
    %25 = tpu.matmul %17, %13, %cst_32 {dimension_numbers = #tpu.dot_dimension_numbers<[1], [0], [0], [1], [0, 0, 1, 1], [], []>} : vector<4x32xf32>, vector<32x96xf32>, vector<4x96xf32> -> vector<4x96xf32>
    %26 = vector.extract_strided_slice %19 {offsets = [0, 0], sizes = [4, 32], strides = [1, 1]} : vector<4x96xf32> to vector<4x32xf32>
    %27 = vector.extract_strided_slice %25 {offsets = [0, 0], sizes = [4, 32], strides = [1, 1]} : vector<4x96xf32> to vector<4x32xf32>
    %28 = arith.addf %26, %27 : vector<4x32xf32>
    %29 = arith.negf %28 : vector<4x32xf32>
    %30 = math.exp %29 : vector<4x32xf32>
    %cst_33 = arith.constant 1.000000e+00 : f32
    %31 = vector.broadcast %cst_33 : f32 to vector<4x32xf32>
    %32 = arith.addf %31, %30 : vector<4x32xf32>
    %33 = arith.divf %31, %32 : vector<4x32xf32>
    %34 = vector.extract_strided_slice %19 {offsets = [0, 32], sizes = [4, 32], strides = [1, 1]} : vector<4x96xf32> to vector<4x32xf32>
    %35 = vector.extract_strided_slice %25 {offsets = [0, 32], sizes = [4, 32], strides = [1, 1]} : vector<4x96xf32> to vector<4x32xf32>
    %36 = arith.addf %34, %35 : vector<4x32xf32>
    %37 = arith.negf %36 : vector<4x32xf32>
    %38 = math.exp %37 : vector<4x32xf32>
    %cst_34 = arith.constant 1.000000e+00 : f32
    %39 = vector.broadcast %cst_34 : f32 to vector<4x32xf32>
    %40 = arith.addf %39, %38 : vector<4x32xf32>
    %41 = arith.divf %39, %40 : vector<4x32xf32>
    %42 = vector.extract_strided_slice %19 {offsets = [0, 64], sizes = [4, 32], strides = [1, 1]} : vector<4x96xf32> to vector<4x32xf32>
    %43 = vector.extract_strided_slice %25 {offsets = [0, 64], sizes = [4, 32], strides = [1, 1]} : vector<4x96xf32> to vector<4x32xf32>
    %44 = vector.broadcast %15 : vector<1x32xf32> to vector<4x32xf32>
    %45 = arith.addf %43, %44 : vector<4x32xf32>
    %46 = arith.mulf %33, %45 : vector<4x32xf32>
    %47 = arith.addf %42, %46 : vector<4x32xf32>
    %48 = math.tanh %47 : vector<4x32xf32>
    %49 = arith.subf %17, %48 : vector<4x32xf32>
    %50 = arith.mulf %41, %49 : vector<4x32xf32>
    %51 = arith.addf %48, %50 : vector<4x32xf32>
    %cst_35 = arith.constant dense<0.000000e+00> : vector<4x96xf32>
    %52 = tpu.matmul %18, %14, %cst_35 {dimension_numbers = #tpu.dot_dimension_numbers<[1], [0], [0], [1], [0, 0, 1, 1], [], []>} : vector<4x32xf32>, vector<32x96xf32>, vector<4x96xf32> -> vector<4x96xf32>
    %53 = vector.extract_strided_slice %20 {offsets = [0, 0], sizes = [4, 32], strides = [1, 1]} : vector<4x96xf32> to vector<4x32xf32>
    %54 = vector.extract_strided_slice %52 {offsets = [0, 0], sizes = [4, 32], strides = [1, 1]} : vector<4x96xf32> to vector<4x32xf32>
    %55 = arith.addf %53, %54 : vector<4x32xf32>
    %56 = arith.negf %55 : vector<4x32xf32>
    %57 = math.exp %56 : vector<4x32xf32>
    %cst_36 = arith.constant 1.000000e+00 : f32
    %58 = vector.broadcast %cst_36 : f32 to vector<4x32xf32>
    %59 = arith.addf %58, %57 : vector<4x32xf32>
    %60 = arith.divf %58, %59 : vector<4x32xf32>
    %61 = vector.extract_strided_slice %20 {offsets = [0, 32], sizes = [4, 32], strides = [1, 1]} : vector<4x96xf32> to vector<4x32xf32>
    %62 = vector.extract_strided_slice %52 {offsets = [0, 32], sizes = [4, 32], strides = [1, 1]} : vector<4x96xf32> to vector<4x32xf32>
    %63 = arith.addf %61, %62 : vector<4x32xf32>
    %64 = arith.negf %63 : vector<4x32xf32>
    %65 = math.exp %64 : vector<4x32xf32>
    %cst_37 = arith.constant 1.000000e+00 : f32
    %66 = vector.broadcast %cst_37 : f32 to vector<4x32xf32>
    %67 = arith.addf %66, %65 : vector<4x32xf32>
    %68 = arith.divf %66, %67 : vector<4x32xf32>
    %69 = vector.extract_strided_slice %20 {offsets = [0, 64], sizes = [4, 32], strides = [1, 1]} : vector<4x96xf32> to vector<4x32xf32>
    %70 = vector.extract_strided_slice %52 {offsets = [0, 64], sizes = [4, 32], strides = [1, 1]} : vector<4x96xf32> to vector<4x32xf32>
    %71 = vector.broadcast %16 : vector<1x32xf32> to vector<4x32xf32>
    %72 = arith.addf %70, %71 : vector<4x32xf32>
    %73 = arith.mulf %60, %72 : vector<4x32xf32>
    %74 = arith.addf %69, %73 : vector<4x32xf32>
    %75 = math.tanh %74 : vector<4x32xf32>
    %76 = arith.subf %18, %75 : vector<4x32xf32>
    %77 = arith.mulf %68, %76 : vector<4x32xf32>
    %78 = arith.addf %75, %77 : vector<4x32xf32>
    %79 = arith.subf %51, %17 : vector<4x32xf32>
    %80 = arith.mulf %22, %79 : vector<4x32xf32>
    %81 = arith.addf %17, %80 : vector<4x32xf32>
    %82 = arith.subf %78, %18 : vector<4x32xf32>
    %83 = arith.mulf %24, %82 : vector<4x32xf32>
    %84 = arith.addf %18, %83 : vector<4x32xf32>
    %c0_38 = arith.constant 0 : index
    %c0_39 = arith.constant 0 : index
    %c0_40 = arith.constant 0 : index
    %85 = vector.load %arg16[%c0_38, %c0_39, %c0_40] : memref<8x4x32xf32, #tpu.memory_space<vmem>>, vector<1x4x32xf32>
    %86 = vector.shape_cast %85 : vector<1x4x32xf32> to vector<4x32xf32>
    %87 = vector.shape_cast %81 : vector<4x32xf32> to vector<1x4x32xf32>
    tpu.vector_store %arg16[%c0_38, %c0_39, %c0_40], %87 {strides = array<i32>} : memref<8x4x32xf32, #tpu.memory_space<vmem>>, vector<1x4x32xf32>,
    %c7_41 = arith.constant 7 : index
    %c0_42 = arith.constant 0 : index
    %c0_43 = arith.constant 0 : index
    %88 = vector.load %arg17[%c7_41, %c0_42, %c0_43] : memref<8x4x32xf32, #tpu.memory_space<vmem>>, vector<1x4x32xf32>
    %89 = vector.shape_cast %88 : vector<1x4x32xf32> to vector<4x32xf32>
    %90 = vector.shape_cast %84 : vector<4x32xf32> to vector<1x4x32xf32>
    tpu.vector_store %arg17[%c7_41, %c0_42, %c0_43], %90 {strides = array<i32>} : memref<8x4x32xf32, #tpu.memory_space<vmem>>, vector<1x4x32xf32>,
    %c4 = arith.constant 4 : index
    %c0_44 = arith.constant 0 : index
    %91 = vector.load %arg14[%c4, %c0_44] : memref<32x96xf32, #tpu.memory_space<vmem>>, vector<4x96xf32>
    %c24 = arith.constant 24 : index
    %c0_45 = arith.constant 0 : index
    %92 = vector.load %arg15[%c24, %c0_45] : memref<32x96xf32, #tpu.memory_space<vmem>>, vector<4x96xf32>
    %c1 = arith.constant 1 : index
    %c0_46 = arith.constant 0 : index
    %c0_47 = arith.constant 0 : index
    %93 = vector.load %arg1[%c1, %c0_46, %c0_47] : memref<8x4x32xf32, #tpu.memory_space<vmem>>, vector<1x4x32xf32>
    %94 = vector.shape_cast %93 : vector<1x4x32xf32> to vector<4x32xf32>
    %c6 = arith.constant 6 : index
    %c0_48 = arith.constant 0 : index
    %c0_49 = arith.constant 0 : index
    %95 = vector.load %arg1[%c6, %c0_48, %c0_49] : memref<8x4x32xf32, #tpu.memory_space<vmem>>, vector<1x4x32xf32>
    %96 = vector.shape_cast %95 : vector<1x4x32xf32> to vector<4x32xf32>
    %cst_50 = arith.constant dense<0.000000e+00> : vector<4x96xf32>
    %97 = tpu.matmul %81, %13, %cst_50 {dimension_numbers = #tpu.dot_dimension_numbers<[1], [0], [0], [1], [0, 0, 1, 1], [], []>} : vector<4x32xf32>, vector<32x96xf32>, vector<4x96xf32> -> vector<4x96xf32>
    %98 = vector.extract_strided_slice %91 {offsets = [0, 0], sizes = [4, 32], strides = [1, 1]} : vector<4x96xf32> to vector<4x32xf32>
    %99 = vector.extract_strided_slice %97 {offsets = [0, 0], sizes = [4, 32], strides = [1, 1]} : vector<4x96xf32> to vector<4x32xf32>
    %100 = arith.addf %98, %99 : vector<4x32xf32>
    %101 = arith.negf %100 : vector<4x32xf32>
    %102 = math.exp %101 : vector<4x32xf32>
    %cst_51 = arith.constant 1.000000e+00 : f32
    %103 = vector.broadcast %cst_51 : f32 to vector<4x32xf32>
    %104 = arith.addf %103, %102 : vector<4x32xf32>
    %105 = arith.divf %103, %104 : vector<4x32xf32>
    %106 = vector.extract_strided_slice %91 {offsets = [0, 32], sizes = [4, 32], strides = [1, 1]} : vector<4x96xf32> to vector<4x32xf32>
    %107 = vector.extract_strided_slice %97 {offsets = [0, 32], sizes = [4, 32], strides = [1, 1]} : vector<4x96xf32> to vector<4x32xf32>
    %108 = arith.addf %106, %107 : vector<4x32xf32>
    %109 = arith.negf %108 : vector<4x32xf32>
    %110 = math.exp %109 : vector<4x32xf32>
    %cst_52 = arith.constant 1.000000e+00 : f32
    %111 = vector.broadcast %cst_52 : f32 to vector<4x32xf32>
    %112 = arith.addf %111, %110 : vector<4x32xf32>
    %113 = arith.divf %111, %112 : vector<4x32xf32>
    %114 = vector.extract_strided_slice %91 {offsets = [0, 64], sizes = [4, 32], strides = [1, 1]} : vector<4x96xf32> to vector<4x32xf32>
    %115 = vector.extract_strided_slice %97 {offsets = [0, 64], sizes = [4, 32], strides = [1, 1]} : vector<4x96xf32> to vector<4x32xf32>
    %116 = vector.broadcast %15 : vector<1x32xf32> to vector<4x32xf32>
    %117 = arith.addf %115, %116 : vector<4x32xf32>
    %118 = arith.mulf %105, %117 : vector<4x32xf32>
    %119 = arith.addf %114, %118 : vector<4x32xf32>
    %120 = math.tanh %119 : vector<4x32xf32>
    %121 = arith.subf %81, %120 : vector<4x32xf32>
    %122 = arith.mulf %113, %121 : vector<4x32xf32>
    %123 = arith.addf %120, %122 : vector<4x32xf32>
    %cst_53 = arith.constant dense<0.000000e+00> : vector<4x96xf32>
    %124 = tpu.matmul %84, %14, %cst_53 {dimension_numbers = #tpu.dot_dimension_numbers<[1], [0], [0], [1], [0, 0, 1, 1], [], []>} : vector<4x32xf32>, vector<32x96xf32>, vector<4x96xf32> -> vector<4x96xf32>
    %125 = vector.extract_strided_slice %92 {offsets = [0, 0], sizes = [4, 32], strides = [1, 1]} : vector<4x96xf32> to vector<4x32xf32>
    %126 = vector.extract_strided_slice %124 {offsets = [0, 0], sizes = [4, 32], strides = [1, 1]} : vector<4x96xf32> to vector<4x32xf32>
    %127 = arith.addf %125, %126 : vector<4x32xf32>
    %128 = arith.negf %127 : vector<4x32xf32>
    %129 = math.exp %128 : vector<4x32xf32>
    %cst_54 = arith.constant 1.000000e+00 : f32
    %130 = vector.broadcast %cst_54 : f32 to vector<4x32xf32>
    %131 = arith.addf %130, %129 : vector<4x32xf32>
    %132 = arith.divf %130, %131 : vector<4x32xf32>
    %133 = vector.extract_strided_slice %92 {offsets = [0, 32], sizes = [4, 32], strides = [1, 1]} : vector<4x96xf32> to vector<4x32xf32>
    %134 = vector.extract_strided_slice %124 {offsets = [0, 32], sizes = [4, 32], strides = [1, 1]} : vector<4x96xf32> to vector<4x32xf32>
    %135 = arith.addf %133, %134 : vector<4x32xf32>
    %136 = arith.negf %135 : vector<4x32xf32>
    %137 = math.exp %136 : vector<4x32xf32>
    %cst_55 = arith.constant 1.000000e+00 : f32
    %138 = vector.broadcast %cst_55 : f32 to vector<4x32xf32>
    %139 = arith.addf %138, %137 : vector<4x32xf32>
    %140 = arith.divf %138, %139 : vector<4x32xf32>
    %141 = vector.extract_strided_slice %92 {offsets = [0, 64], sizes = [4, 32], strides = [1, 1]} : vector<4x96xf32> to vector<4x32xf32>
    %142 = vector.extract_strided_slice %124 {offsets = [0, 64], sizes = [4, 32], strides = [1, 1]} : vector<4x96xf32> to vector<4x32xf32>
    %143 = vector.broadcast %16 : vector<1x32xf32> to vector<4x32xf32>
    %144 = arith.addf %142, %143 : vector<4x32xf32>
    %145 = arith.mulf %132, %144 : vector<4x32xf32>
    %146 = arith.addf %141, %145 : vector<4x32xf32>
    %147 = math.tanh %146 : vector<4x32xf32>
    %148 = arith.subf %84, %147 : vector<4x32xf32>
    %149 = arith.mulf %140, %148 : vector<4x32xf32>
    %150 = arith.addf %147, %149 : vector<4x32xf32>
    %151 = arith.subf %123, %81 : vector<4x32xf32>
    %152 = arith.mulf %94, %151 : vector<4x32xf32>
    %153 = arith.addf %81, %152 : vector<4x32xf32>
    %154 = arith.subf %150, %84 : vector<4x32xf32>
    %155 = arith.mulf %96, %154 : vector<4x32xf32>
    %156 = arith.addf %84, %155 : vector<4x32xf32>
    %c1_56 = arith.constant 1 : index
    %c0_57 = arith.constant 0 : index
    %c0_58 = arith.constant 0 : index
    %157 = vector.load %arg16[%c1_56, %c0_57, %c0_58] : memref<8x4x32xf32, #tpu.memory_space<vmem>>, vector<1x4x32xf32>
    %158 = vector.shape_cast %157 : vector<1x4x32xf32> to vector<4x32xf32>
    %159 = vector.shape_cast %153 : vector<4x32xf32> to vector<1x4x32xf32>
    tpu.vector_store %arg16[%c1_56, %c0_57, %c0_58], %159 {strides = array<i32>} : memref<8x4x32xf32, #tpu.memory_space<vmem>>, vector<1x4x32xf32>,
    %c6_59 = arith.constant 6 : index
    %c0_60 = arith.constant 0 : index
    %c0_61 = arith.constant 0 : index
    %160 = vector.load %arg17[%c6_59, %c0_60, %c0_61] : memref<8x4x32xf32, #tpu.memory_space<vmem>>, vector<1x4x32xf32>
    %161 = vector.shape_cast %160 : vector<1x4x32xf32> to vector<4x32xf32>
    %162 = vector.shape_cast %156 : vector<4x32xf32> to vector<1x4x32xf32>
    tpu.vector_store %arg17[%c6_59, %c0_60, %c0_61], %162 {strides = array<i32>} : memref<8x4x32xf32, #tpu.memory_space<vmem>>, vector<1x4x32xf32>,
    %c8 = arith.constant 8 : index
    %c0_62 = arith.constant 0 : index
    %163 = vector.load %arg14[%c8, %c0_62] : memref<32x96xf32, #tpu.memory_space<vmem>>, vector<4x96xf32>
    %c20 = arith.constant 20 : index
    %c0_63 = arith.constant 0 : index
    %164 = vector.load %arg15[%c20, %c0_63] : memref<32x96xf32, #tpu.memory_space<vmem>>, vector<4x96xf32>
    %c2 = arith.constant 2 : index
    %c0_64 = arith.constant 0 : index
    %c0_65 = arith.constant 0 : index
    %165 = vector.load %arg1[%c2, %c0_64, %c0_65] : memref<8x4x32xf32, #tpu.memory_space<vmem>>, vector<1x4x32xf32>
    %166 = vector.shape_cast %165 : vector<1x4x32xf32> to vector<4x32xf32>
    %c5 = arith.constant 5 : index
    %c0_66 = arith.constant 0 : index
    %c0_67 = arith.constant 0 : index
    %167 = vector.load %arg1[%c5, %c0_66, %c0_67] : memref<8x4x32xf32, #tpu.memory_space<vmem>>, vector<1x4x32xf32>
    %168 = vector.shape_cast %167 : vector<1x4x32xf32> to vector<4x32xf32>
    %cst_68 = arith.constant dense<0.000000e+00> : vector<4x96xf32>
    %169 = tpu.matmul %153, %13, %cst_68 {dimension_numbers = #tpu.dot_dimension_numbers<[1], [0], [0], [1], [0, 0, 1, 1], [], []>} : vector<4x32xf32>, vector<32x96xf32>, vector<4x96xf32> -> vector<4x96xf32>
    %170 = vector.extract_strided_slice %163 {offsets = [0, 0], sizes = [4, 32], strides = [1, 1]} : vector<4x96xf32> to vector<4x32xf32>
    %171 = vector.extract_strided_slice %169 {offsets = [0, 0], sizes = [4, 32], strides = [1, 1]} : vector<4x96xf32> to vector<4x32xf32>
    %172 = arith.addf %170, %171 : vector<4x32xf32>
    %173 = arith.negf %172 : vector<4x32xf32>
    %174 = math.exp %173 : vector<4x32xf32>
    %cst_69 = arith.constant 1.000000e+00 : f32
    %175 = vector.broadcast %cst_69 : f32 to vector<4x32xf32>
    %176 = arith.addf %175, %174 : vector<4x32xf32>
    %177 = arith.divf %175, %176 : vector<4x32xf32>
    %178 = vector.extract_strided_slice %163 {offsets = [0, 32], sizes = [4, 32], strides = [1, 1]} : vector<4x96xf32> to vector<4x32xf32>
    %179 = vector.extract_strided_slice %169 {offsets = [0, 32], sizes = [4, 32], strides = [1, 1]} : vector<4x96xf32> to vector<4x32xf32>
    %180 = arith.addf %178, %179 : vector<4x32xf32>
    %181 = arith.negf %180 : vector<4x32xf32>
    %182 = math.exp %181 : vector<4x32xf32>
    %cst_70 = arith.constant 1.000000e+00 : f32
    %183 = vector.broadcast %cst_70 : f32 to vector<4x32xf32>
    %184 = arith.addf %183, %182 : vector<4x32xf32>
    %185 = arith.divf %183, %184 : vector<4x32xf32>
    %186 = vector.extract_strided_slice %163 {offsets = [0, 64], sizes = [4, 32], strides = [1, 1]} : vector<4x96xf32> to vector<4x32xf32>
    %187 = vector.extract_strided_slice %169 {offsets = [0, 64], sizes = [4, 32], strides = [1, 1]} : vector<4x96xf32> to vector<4x32xf32>
    %188 = vector.broadcast %15 : vector<1x32xf32> to vector<4x32xf32>
    %189 = arith.addf %187, %188 : vector<4x32xf32>
    %190 = arith.mulf %177, %189 : vector<4x32xf32>
    %191 = arith.addf %186, %190 : vector<4x32xf32>
    %192 = math.tanh %191 : vector<4x32xf32>
    %193 = arith.subf %153, %192 : vector<4x32xf32>
    %194 = arith.mulf %185, %193 : vector<4x32xf32>
    %195 = arith.addf %192, %194 : vector<4x32xf32>
    %cst_71 = arith.constant dense<0.000000e+00> : vector<4x96xf32>
    %196 = tpu.matmul %156, %14, %cst_71 {dimension_numbers = #tpu.dot_dimension_numbers<[1], [0], [0], [1], [0, 0, 1, 1], [], []>} : vector<4x32xf32>, vector<32x96xf32>, vector<4x96xf32> -> vector<4x96xf32>
    %197 = vector.extract_strided_slice %164 {offsets = [0, 0], sizes = [4, 32], strides = [1, 1]} : vector<4x96xf32> to vector<4x32xf32>
    %198 = vector.extract_strided_slice %196 {offsets = [0, 0], sizes = [4, 32], strides = [1, 1]} : vector<4x96xf32> to vector<4x32xf32>
    %199 = arith.addf %197, %198 : vector<4x32xf32>
    %200 = arith.negf %199 : vector<4x32xf32>
    %201 = math.exp %200 : vector<4x32xf32>
    %cst_72 = arith.constant 1.000000e+00 : f32
    %202 = vector.broadcast %cst_72 : f32 to vector<4x32xf32>
    %203 = arith.addf %202, %201 : vector<4x32xf32>
    %204 = arith.divf %202, %203 : vector<4x32xf32>
    %205 = vector.extract_strided_slice %164 {offsets = [0, 32], sizes = [4, 32], strides = [1, 1]} : vector<4x96xf32> to vector<4x32xf32>
    %206 = vector.extract_strided_slice %196 {offsets = [0, 32], sizes = [4, 32], strides = [1, 1]} : vector<4x96xf32> to vector<4x32xf32>
    %207 = arith.addf %205, %206 : vector<4x32xf32>
    %208 = arith.negf %207 : vector<4x32xf32>
    %209 = math.exp %208 : vector<4x32xf32>
    %cst_73 = arith.constant 1.000000e+00 : f32
    %210 = vector.broadcast %cst_73 : f32 to vector<4x32xf32>
    %211 = arith.addf %210, %209 : vector<4x32xf32>
    %212 = arith.divf %210, %211 : vector<4x32xf32>
    %213 = vector.extract_strided_slice %164 {offsets = [0, 64], sizes = [4, 32], strides = [1, 1]} : vector<4x96xf32> to vector<4x32xf32>
    %214 = vector.extract_strided_slice %196 {offsets = [0, 64], sizes = [4, 32], strides = [1, 1]} : vector<4x96xf32> to vector<4x32xf32>
    %215 = vector.broadcast %16 : vector<1x32xf32> to vector<4x32xf32>
    %216 = arith.addf %214, %215 : vector<4x32xf32>
    %217 = arith.mulf %204, %216 : vector<4x32xf32>
    %218 = arith.addf %213, %217 : vector<4x32xf32>
    %219 = math.tanh %218 : vector<4x32xf32>
    %220 = arith.subf %156, %219 : vector<4x32xf32>
    %221 = arith.mulf %212, %220 : vector<4x32xf32>
    %222 = arith.addf %219, %221 : vector<4x32xf32>
    %223 = arith.subf %195, %153 : vector<4x32xf32>
    %224 = arith.mulf %166, %223 : vector<4x32xf32>
    %225 = arith.addf %153, %224 : vector<4x32xf32>
    %226 = arith.subf %222, %156 : vector<4x32xf32>
    %227 = arith.mulf %168, %226 : vector<4x32xf32>
    %228 = arith.addf %156, %227 : vector<4x32xf32>
    %c2_74 = arith.constant 2 : index
    %c0_75 = arith.constant 0 : index
    %c0_76 = arith.constant 0 : index
    %229 = vector.load %arg16[%c2_74, %c0_75, %c0_76] : memref<8x4x32xf32, #tpu.memory_space<vmem>>, vector<1x4x32xf32>
    %230 = vector.shape_cast %229 : vector<1x4x32xf32> to vector<4x32xf32>
    %231 = vector.shape_cast %225 : vector<4x32xf32> to vector<1x4x32xf32>
    tpu.vector_store %arg16[%c2_74, %c0_75, %c0_76], %231 {strides = array<i32>} : memref<8x4x32xf32, #tpu.memory_space<vmem>>, vector<1x4x32xf32>,
    %c5_77 = arith.constant 5 : index
    %c0_78 = arith.constant 0 : index
    %c0_79 = arith.constant 0 : index
    %232 = vector.load %arg17[%c5_77, %c0_78, %c0_79] : memref<8x4x32xf32, #tpu.memory_space<vmem>>, vector<1x4x32xf32>
    %233 = vector.shape_cast %232 : vector<1x4x32xf32> to vector<4x32xf32>
    %234 = vector.shape_cast %228 : vector<4x32xf32> to vector<1x4x32xf32>
    tpu.vector_store %arg17[%c5_77, %c0_78, %c0_79], %234 {strides = array<i32>} : memref<8x4x32xf32, #tpu.memory_space<vmem>>, vector<1x4x32xf32>,
    %c12 = arith.constant 12 : index
    %c0_80 = arith.constant 0 : index
    %235 = vector.load %arg14[%c12, %c0_80] : memref<32x96xf32, #tpu.memory_space<vmem>>, vector<4x96xf32>
    %c16 = arith.constant 16 : index
    %c0_81 = arith.constant 0 : index
    %236 = vector.load %arg15[%c16, %c0_81] : memref<32x96xf32, #tpu.memory_space<vmem>>, vector<4x96xf32>
    %c3 = arith.constant 3 : index
    %c0_82 = arith.constant 0 : index
    %c0_83 = arith.constant 0 : index
    %237 = vector.load %arg1[%c3, %c0_82, %c0_83] : memref<8x4x32xf32, #tpu.memory_space<vmem>>, vector<1x4x32xf32>
    %238 = vector.shape_cast %237 : vector<1x4x32xf32> to vector<4x32xf32>
    %c4_84 = arith.constant 4 : index
    %c0_85 = arith.constant 0 : index
    %c0_86 = arith.constant 0 : index
    %239 = vector.load %arg1[%c4_84, %c0_85, %c0_86] : memref<8x4x32xf32, #tpu.memory_space<vmem>>, vector<1x4x32xf32>
    %240 = vector.shape_cast %239 : vector<1x4x32xf32> to vector<4x32xf32>
    %cst_87 = arith.constant dense<0.000000e+00> : vector<4x96xf32>
    %241 = tpu.matmul %225, %13, %cst_87 {dimension_numbers = #tpu.dot_dimension_numbers<[1], [0], [0], [1], [0, 0, 1, 1], [], []>} : vector<4x32xf32>, vector<32x96xf32>, vector<4x96xf32> -> vector<4x96xf32>
    %242 = vector.extract_strided_slice %235 {offsets = [0, 0], sizes = [4, 32], strides = [1, 1]} : vector<4x96xf32> to vector<4x32xf32>
    %243 = vector.extract_strided_slice %241 {offsets = [0, 0], sizes = [4, 32], strides = [1, 1]} : vector<4x96xf32> to vector<4x32xf32>
    %244 = arith.addf %242, %243 : vector<4x32xf32>
    %245 = arith.negf %244 : vector<4x32xf32>
    %246 = math.exp %245 : vector<4x32xf32>
    %cst_88 = arith.constant 1.000000e+00 : f32
    %247 = vector.broadcast %cst_88 : f32 to vector<4x32xf32>
    %248 = arith.addf %247, %246 : vector<4x32xf32>
    %249 = arith.divf %247, %248 : vector<4x32xf32>
    %250 = vector.extract_strided_slice %235 {offsets = [0, 32], sizes = [4, 32], strides = [1, 1]} : vector<4x96xf32> to vector<4x32xf32>
    %251 = vector.extract_strided_slice %241 {offsets = [0, 32], sizes = [4, 32], strides = [1, 1]} : vector<4x96xf32> to vector<4x32xf32>
    %252 = arith.addf %250, %251 : vector<4x32xf32>
    %253 = arith.negf %252 : vector<4x32xf32>
    %254 = math.exp %253 : vector<4x32xf32>
    %cst_89 = arith.constant 1.000000e+00 : f32
    %255 = vector.broadcast %cst_89 : f32 to vector<4x32xf32>
    %256 = arith.addf %255, %254 : vector<4x32xf32>
    %257 = arith.divf %255, %256 : vector<4x32xf32>
    %258 = vector.extract_strided_slice %235 {offsets = [0, 64], sizes = [4, 32], strides = [1, 1]} : vector<4x96xf32> to vector<4x32xf32>
    %259 = vector.extract_strided_slice %241 {offsets = [0, 64], sizes = [4, 32], strides = [1, 1]} : vector<4x96xf32> to vector<4x32xf32>
    %260 = vector.broadcast %15 : vector<1x32xf32> to vector<4x32xf32>
    %261 = arith.addf %259, %260 : vector<4x32xf32>
    %262 = arith.mulf %249, %261 : vector<4x32xf32>
    %263 = arith.addf %258, %262 : vector<4x32xf32>
    %264 = math.tanh %263 : vector<4x32xf32>
    %265 = arith.subf %225, %264 : vector<4x32xf32>
    %266 = arith.mulf %257, %265 : vector<4x32xf32>
    %267 = arith.addf %264, %266 : vector<4x32xf32>
    %cst_90 = arith.constant dense<0.000000e+00> : vector<4x96xf32>
    %268 = tpu.matmul %228, %14, %cst_90 {dimension_numbers = #tpu.dot_dimension_numbers<[1], [0], [0], [1], [0, 0, 1, 1], [], []>} : vector<4x32xf32>, vector<32x96xf32>, vector<4x96xf32> -> vector<4x96xf32>
    %269 = vector.extract_strided_slice %236 {offsets = [0, 0], sizes = [4, 32], strides = [1, 1]} : vector<4x96xf32> to vector<4x32xf32>
    %270 = vector.extract_strided_slice %268 {offsets = [0, 0], sizes = [4, 32], strides = [1, 1]} : vector<4x96xf32> to vector<4x32xf32>
    %271 = arith.addf %269, %270 : vector<4x32xf32>
    %272 = arith.negf %271 : vector<4x32xf32>
    %273 = math.exp %272 : vector<4x32xf32>
    %cst_91 = arith.constant 1.000000e+00 : f32
    %274 = vector.broadcast %cst_91 : f32 to vector<4x32xf32>
    %275 = arith.addf %274, %273 : vector<4x32xf32>
    %276 = arith.divf %274, %275 : vector<4x32xf32>
    %277 = vector.extract_strided_slice %236 {offsets = [0, 32], sizes = [4, 32], strides = [1, 1]} : vector<4x96xf32> to vector<4x32xf32>
    %278 = vector.extract_strided_slice %268 {offsets = [0, 32], sizes = [4, 32], strides = [1, 1]} : vector<4x96xf32> to vector<4x32xf32>
    %279 = arith.addf %277, %278 : vector<4x32xf32>
    %280 = arith.negf %279 : vector<4x32xf32>
    %281 = math.exp %280 : vector<4x32xf32>
    %cst_92 = arith.constant 1.000000e+00 : f32
    %282 = vector.broadcast %cst_92 : f32 to vector<4x32xf32>
    %283 = arith.addf %282, %281 : vector<4x32xf32>
    %284 = arith.divf %282, %283 : vector<4x32xf32>
    %285 = vector.extract_strided_slice %236 {offsets = [0, 64], sizes = [4, 32], strides = [1, 1]} : vector<4x96xf32> to vector<4x32xf32>
    %286 = vector.extract_strided_slice %268 {offsets = [0, 64], sizes = [4, 32], strides = [1, 1]} : vector<4x96xf32> to vector<4x32xf32>
    %287 = vector.broadcast %16 : vector<1x32xf32> to vector<4x32xf32>
    %288 = arith.addf %286, %287 : vector<4x32xf32>
    %289 = arith.mulf %276, %288 : vector<4x32xf32>
    %290 = arith.addf %285, %289 : vector<4x32xf32>
    %291 = math.tanh %290 : vector<4x32xf32>
    %292 = arith.subf %228, %291 : vector<4x32xf32>
    %293 = arith.mulf %284, %292 : vector<4x32xf32>
    %294 = arith.addf %291, %293 : vector<4x32xf32>
    %295 = arith.subf %267, %225 : vector<4x32xf32>
    %296 = arith.mulf %238, %295 : vector<4x32xf32>
    %297 = arith.addf %225, %296 : vector<4x32xf32>
    %298 = arith.subf %294, %228 : vector<4x32xf32>
    %299 = arith.mulf %240, %298 : vector<4x32xf32>
    %300 = arith.addf %228, %299 : vector<4x32xf32>
    %c3_93 = arith.constant 3 : index
    %c0_94 = arith.constant 0 : index
    %c0_95 = arith.constant 0 : index
    %301 = vector.load %arg16[%c3_93, %c0_94, %c0_95] : memref<8x4x32xf32, #tpu.memory_space<vmem>>, vector<1x4x32xf32>
    %302 = vector.shape_cast %301 : vector<1x4x32xf32> to vector<4x32xf32>
    %303 = vector.shape_cast %297 : vector<4x32xf32> to vector<1x4x32xf32>
    tpu.vector_store %arg16[%c3_93, %c0_94, %c0_95], %303 {strides = array<i32>} : memref<8x4x32xf32, #tpu.memory_space<vmem>>, vector<1x4x32xf32>,
    %c4_96 = arith.constant 4 : index
    %c0_97 = arith.constant 0 : index
    %c0_98 = arith.constant 0 : index
    %304 = vector.load %arg17[%c4_96, %c0_97, %c0_98] : memref<8x4x32xf32, #tpu.memory_space<vmem>>, vector<1x4x32xf32>
    %305 = vector.shape_cast %304 : vector<1x4x32xf32> to vector<4x32xf32>
    %306 = vector.shape_cast %300 : vector<4x32xf32> to vector<1x4x32xf32>
    tpu.vector_store %arg17[%c4_96, %c0_97, %c0_98], %306 {strides = array<i32>} : memref<8x4x32xf32, #tpu.memory_space<vmem>>, vector<1x4x32xf32>,
    %c16_99 = arith.constant 16 : index
    %c0_100 = arith.constant 0 : index
    %307 = vector.load %arg14[%c16_99, %c0_100] : memref<32x96xf32, #tpu.memory_space<vmem>>, vector<4x96xf32>
    %c12_101 = arith.constant 12 : index
    %c0_102 = arith.constant 0 : index
    %308 = vector.load %arg15[%c12_101, %c0_102] : memref<32x96xf32, #tpu.memory_space<vmem>>, vector<4x96xf32>
    %c4_103 = arith.constant 4 : index
    %c0_104 = arith.constant 0 : index
    %c0_105 = arith.constant 0 : index
    %309 = vector.load %arg1[%c4_103, %c0_104, %c0_105] : memref<8x4x32xf32, #tpu.memory_space<vmem>>, vector<1x4x32xf32>
    %310 = vector.shape_cast %309 : vector<1x4x32xf32> to vector<4x32xf32>
    %c3_106 = arith.constant 3 : index
    %c0_107 = arith.constant 0 : index
    %c0_108 = arith.constant 0 : index
    %311 = vector.load %arg1[%c3_106, %c0_107, %c0_108] : memref<8x4x32xf32, #tpu.memory_space<vmem>>, vector<1x4x32xf32>
    %312 = vector.shape_cast %311 : vector<1x4x32xf32> to vector<4x32xf32>
    %cst_109 = arith.constant dense<0.000000e+00> : vector<4x96xf32>
    %313 = tpu.matmul %297, %13, %cst_109 {dimension_numbers = #tpu.dot_dimension_numbers<[1], [0], [0], [1], [0, 0, 1, 1], [], []>} : vector<4x32xf32>, vector<32x96xf32>, vector<4x96xf32> -> vector<4x96xf32>
    %314 = vector.extract_strided_slice %307 {offsets = [0, 0], sizes = [4, 32], strides = [1, 1]} : vector<4x96xf32> to vector<4x32xf32>
    %315 = vector.extract_strided_slice %313 {offsets = [0, 0], sizes = [4, 32], strides = [1, 1]} : vector<4x96xf32> to vector<4x32xf32>
    %316 = arith.addf %314, %315 : vector<4x32xf32>
    %317 = arith.negf %316 : vector<4x32xf32>
    %318 = math.exp %317 : vector<4x32xf32>
    %cst_110 = arith.constant 1.000000e+00 : f32
    %319 = vector.broadcast %cst_110 : f32 to vector<4x32xf32>
    %320 = arith.addf %319, %318 : vector<4x32xf32>
    %321 = arith.divf %319, %320 : vector<4x32xf32>
    %322 = vector.extract_strided_slice %307 {offsets = [0, 32], sizes = [4, 32], strides = [1, 1]} : vector<4x96xf32> to vector<4x32xf32>
    %323 = vector.extract_strided_slice %313 {offsets = [0, 32], sizes = [4, 32], strides = [1, 1]} : vector<4x96xf32> to vector<4x32xf32>
    %324 = arith.addf %322, %323 : vector<4x32xf32>
    %325 = arith.negf %324 : vector<4x32xf32>
    %326 = math.exp %325 : vector<4x32xf32>
    %cst_111 = arith.constant 1.000000e+00 : f32
    %327 = vector.broadcast %cst_111 : f32 to vector<4x32xf32>
    %328 = arith.addf %327, %326 : vector<4x32xf32>
    %329 = arith.divf %327, %328 : vector<4x32xf32>
    %330 = vector.extract_strided_slice %307 {offsets = [0, 64], sizes = [4, 32], strides = [1, 1]} : vector<4x96xf32> to vector<4x32xf32>
    %331 = vector.extract_strided_slice %313 {offsets = [0, 64], sizes = [4, 32], strides = [1, 1]} : vector<4x96xf32> to vector<4x32xf32>
    %332 = vector.broadcast %15 : vector<1x32xf32> to vector<4x32xf32>
    %333 = arith.addf %331, %332 : vector<4x32xf32>
    %334 = arith.mulf %321, %333 : vector<4x32xf32>
    %335 = arith.addf %330, %334 : vector<4x32xf32>
    %336 = math.tanh %335 : vector<4x32xf32>
    %337 = arith.subf %297, %336 : vector<4x32xf32>
    %338 = arith.mulf %329, %337 : vector<4x32xf32>
    %339 = arith.addf %336, %338 : vector<4x32xf32>
    %cst_112 = arith.constant dense<0.000000e+00> : vector<4x96xf32>
    %340 = tpu.matmul %300, %14, %cst_112 {dimension_numbers = #tpu.dot_dimension_numbers<[1], [0], [0], [1], [0, 0, 1, 1], [], []>} : vector<4x32xf32>, vector<32x96xf32>, vector<4x96xf32> -> vector<4x96xf32>
    %341 = vector.extract_strided_slice %308 {offsets = [0, 0], sizes = [4, 32], strides = [1, 1]} : vector<4x96xf32> to vector<4x32xf32>
    %342 = vector.extract_strided_slice %340 {offsets = [0, 0], sizes = [4, 32], strides = [1, 1]} : vector<4x96xf32> to vector<4x32xf32>
    %343 = arith.addf %341, %342 : vector<4x32xf32>
    %344 = arith.negf %343 : vector<4x32xf32>
    %345 = math.exp %344 : vector<4x32xf32>
    %cst_113 = arith.constant 1.000000e+00 : f32
    %346 = vector.broadcast %cst_113 : f32 to vector<4x32xf32>
    %347 = arith.addf %346, %345 : vector<4x32xf32>
    %348 = arith.divf %346, %347 : vector<4x32xf32>
    %349 = vector.extract_strided_slice %308 {offsets = [0, 32], sizes = [4, 32], strides = [1, 1]} : vector<4x96xf32> to vector<4x32xf32>
    %350 = vector.extract_strided_slice %340 {offsets = [0, 32], sizes = [4, 32], strides = [1, 1]} : vector<4x96xf32> to vector<4x32xf32>
    %351 = arith.addf %349, %350 : vector<4x32xf32>
    %352 = arith.negf %351 : vector<4x32xf32>
    %353 = math.exp %352 : vector<4x32xf32>
    %cst_114 = arith.constant 1.000000e+00 : f32
    %354 = vector.broadcast %cst_114 : f32 to vector<4x32xf32>
    %355 = arith.addf %354, %353 : vector<4x32xf32>
    %356 = arith.divf %354, %355 : vector<4x32xf32>
    %357 = vector.extract_strided_slice %308 {offsets = [0, 64], sizes = [4, 32], strides = [1, 1]} : vector<4x96xf32> to vector<4x32xf32>
    %358 = vector.extract_strided_slice %340 {offsets = [0, 64], sizes = [4, 32], strides = [1, 1]} : vector<4x96xf32> to vector<4x32xf32>
    %359 = vector.broadcast %16 : vector<1x32xf32> to vector<4x32xf32>
    %360 = arith.addf %358, %359 : vector<4x32xf32>
    %361 = arith.mulf %348, %360 : vector<4x32xf32>
    %362 = arith.addf %357, %361 : vector<4x32xf32>
    %363 = math.tanh %362 : vector<4x32xf32>
    %364 = arith.subf %300, %363 : vector<4x32xf32>
    %365 = arith.mulf %356, %364 : vector<4x32xf32>
    %366 = arith.addf %363, %365 : vector<4x32xf32>
    %367 = arith.subf %339, %297 : vector<4x32xf32>
    %368 = arith.mulf %310, %367 : vector<4x32xf32>
    %369 = arith.addf %297, %368 : vector<4x32xf32>
    %370 = arith.subf %366, %300 : vector<4x32xf32>
    %371 = arith.mulf %312, %370 : vector<4x32xf32>
    %372 = arith.addf %300, %371 : vector<4x32xf32>
    %c4_115 = arith.constant 4 : index
    %c0_116 = arith.constant 0 : index
    %c0_117 = arith.constant 0 : index
    %373 = vector.load %arg16[%c4_115, %c0_116, %c0_117] : memref<8x4x32xf32, #tpu.memory_space<vmem>>, vector<1x4x32xf32>
    %374 = vector.shape_cast %373 : vector<1x4x32xf32> to vector<4x32xf32>
    %375 = vector.shape_cast %369 : vector<4x32xf32> to vector<1x4x32xf32>
    tpu.vector_store %arg16[%c4_115, %c0_116, %c0_117], %375 {strides = array<i32>} : memref<8x4x32xf32, #tpu.memory_space<vmem>>, vector<1x4x32xf32>,
    %c3_118 = arith.constant 3 : index
    %c0_119 = arith.constant 0 : index
    %c0_120 = arith.constant 0 : index
    %376 = vector.load %arg17[%c3_118, %c0_119, %c0_120] : memref<8x4x32xf32, #tpu.memory_space<vmem>>, vector<1x4x32xf32>
    %377 = vector.shape_cast %376 : vector<1x4x32xf32> to vector<4x32xf32>
    %378 = vector.shape_cast %372 : vector<4x32xf32> to vector<1x4x32xf32>
    tpu.vector_store %arg17[%c3_118, %c0_119, %c0_120], %378 {strides = array<i32>} : memref<8x4x32xf32, #tpu.memory_space<vmem>>, vector<1x4x32xf32>,
    %c20_121 = arith.constant 20 : index
    %c0_122 = arith.constant 0 : index
    %379 = vector.load %arg14[%c20_121, %c0_122] : memref<32x96xf32, #tpu.memory_space<vmem>>, vector<4x96xf32>
    %c8_123 = arith.constant 8 : index
    %c0_124 = arith.constant 0 : index
    %380 = vector.load %arg15[%c8_123, %c0_124] : memref<32x96xf32, #tpu.memory_space<vmem>>, vector<4x96xf32>
    %c5_125 = arith.constant 5 : index
    %c0_126 = arith.constant 0 : index
    %c0_127 = arith.constant 0 : index
    %381 = vector.load %arg1[%c5_125, %c0_126, %c0_127] : memref<8x4x32xf32, #tpu.memory_space<vmem>>, vector<1x4x32xf32>
    %382 = vector.shape_cast %381 : vector<1x4x32xf32> to vector<4x32xf32>
    %c2_128 = arith.constant 2 : index
    %c0_129 = arith.constant 0 : index
    %c0_130 = arith.constant 0 : index
    %383 = vector.load %arg1[%c2_128, %c0_129, %c0_130] : memref<8x4x32xf32, #tpu.memory_space<vmem>>, vector<1x4x32xf32>
    %384 = vector.shape_cast %383 : vector<1x4x32xf32> to vector<4x32xf32>
    %cst_131 = arith.constant dense<0.000000e+00> : vector<4x96xf32>
    %385 = tpu.matmul %369, %13, %cst_131 {dimension_numbers = #tpu.dot_dimension_numbers<[1], [0], [0], [1], [0, 0, 1, 1], [], []>} : vector<4x32xf32>, vector<32x96xf32>, vector<4x96xf32> -> vector<4x96xf32>
    %386 = vector.extract_strided_slice %379 {offsets = [0, 0], sizes = [4, 32], strides = [1, 1]} : vector<4x96xf32> to vector<4x32xf32>
    %387 = vector.extract_strided_slice %385 {offsets = [0, 0], sizes = [4, 32], strides = [1, 1]} : vector<4x96xf32> to vector<4x32xf32>
    %388 = arith.addf %386, %387 : vector<4x32xf32>
    %389 = arith.negf %388 : vector<4x32xf32>
    %390 = math.exp %389 : vector<4x32xf32>
    %cst_132 = arith.constant 1.000000e+00 : f32
    %391 = vector.broadcast %cst_132 : f32 to vector<4x32xf32>
    %392 = arith.addf %391, %390 : vector<4x32xf32>
    %393 = arith.divf %391, %392 : vector<4x32xf32>
    %394 = vector.extract_strided_slice %379 {offsets = [0, 32], sizes = [4, 32], strides = [1, 1]} : vector<4x96xf32> to vector<4x32xf32>
    %395 = vector.extract_strided_slice %385 {offsets = [0, 32], sizes = [4, 32], strides = [1, 1]} : vector<4x96xf32> to vector<4x32xf32>
    %396 = arith.addf %394, %395 : vector<4x32xf32>
    %397 = arith.negf %396 : vector<4x32xf32>
    %398 = math.exp %397 : vector<4x32xf32>
    %cst_133 = arith.constant 1.000000e+00 : f32
    %399 = vector.broadcast %cst_133 : f32 to vector<4x32xf32>
    %400 = arith.addf %399, %398 : vector<4x32xf32>
    %401 = arith.divf %399, %400 : vector<4x32xf32>
    %402 = vector.extract_strided_slice %379 {offsets = [0, 64], sizes = [4, 32], strides = [1, 1]} : vector<4x96xf32> to vector<4x32xf32>
    %403 = vector.extract_strided_slice %385 {offsets = [0, 64], sizes = [4, 32], strides = [1, 1]} : vector<4x96xf32> to vector<4x32xf32>
    %404 = vector.broadcast %15 : vector<1x32xf32> to vector<4x32xf32>
    %405 = arith.addf %403, %404 : vector<4x32xf32>
    %406 = arith.mulf %393, %405 : vector<4x32xf32>
    %407 = arith.addf %402, %406 : vector<4x32xf32>
    %408 = math.tanh %407 : vector<4x32xf32>
    %409 = arith.subf %369, %408 : vector<4x32xf32>
    %410 = arith.mulf %401, %409 : vector<4x32xf32>
    %411 = arith.addf %408, %410 : vector<4x32xf32>
    %cst_134 = arith.constant dense<0.000000e+00> : vector<4x96xf32>
    %412 = tpu.matmul %372, %14, %cst_134 {dimension_numbers = #tpu.dot_dimension_numbers<[1], [0], [0], [1], [0, 0, 1, 1], [], []>} : vector<4x32xf32>, vector<32x96xf32>, vector<4x96xf32> -> vector<4x96xf32>
    %413 = vector.extract_strided_slice %380 {offsets = [0, 0], sizes = [4, 32], strides = [1, 1]} : vector<4x96xf32> to vector<4x32xf32>
    %414 = vector.extract_strided_slice %412 {offsets = [0, 0], sizes = [4, 32], strides = [1, 1]} : vector<4x96xf32> to vector<4x32xf32>
    %415 = arith.addf %413, %414 : vector<4x32xf32>
    %416 = arith.negf %415 : vector<4x32xf32>
    %417 = math.exp %416 : vector<4x32xf32>
    %cst_135 = arith.constant 1.000000e+00 : f32
    %418 = vector.broadcast %cst_135 : f32 to vector<4x32xf32>
    %419 = arith.addf %418, %417 : vector<4x32xf32>
    %420 = arith.divf %418, %419 : vector<4x32xf32>
    %421 = vector.extract_strided_slice %380 {offsets = [0, 32], sizes = [4, 32], strides = [1, 1]} : vector<4x96xf32> to vector<4x32xf32>
    %422 = vector.extract_strided_slice %412 {offsets = [0, 32], sizes = [4, 32], strides = [1, 1]} : vector<4x96xf32> to vector<4x32xf32>
    %423 = arith.addf %421, %422 : vector<4x32xf32>
    %424 = arith.negf %423 : vector<4x32xf32>
    %425 = math.exp %424 : vector<4x32xf32>
    %cst_136 = arith.constant 1.000000e+00 : f32
    %426 = vector.broadcast %cst_136 : f32 to vector<4x32xf32>
    %427 = arith.addf %426, %425 : vector<4x32xf32>
    %428 = arith.divf %426, %427 : vector<4x32xf32>
    %429 = vector.extract_strided_slice %380 {offsets = [0, 64], sizes = [4, 32], strides = [1, 1]} : vector<4x96xf32> to vector<4x32xf32>
    %430 = vector.extract_strided_slice %412 {offsets = [0, 64], sizes = [4, 32], strides = [1, 1]} : vector<4x96xf32> to vector<4x32xf32>
    %431 = vector.broadcast %16 : vector<1x32xf32> to vector<4x32xf32>
    %432 = arith.addf %430, %431 : vector<4x32xf32>
    %433 = arith.mulf %420, %432 : vector<4x32xf32>
    %434 = arith.addf %429, %433 : vector<4x32xf32>
    %435 = math.tanh %434 : vector<4x32xf32>
    %436 = arith.subf %372, %435 : vector<4x32xf32>
    %437 = arith.mulf %428, %436 : vector<4x32xf32>
    %438 = arith.addf %435, %437 : vector<4x32xf32>
    %439 = arith.subf %411, %369 : vector<4x32xf32>
    %440 = arith.mulf %382, %439 : vector<4x32xf32>
    %441 = arith.addf %369, %440 : vector<4x32xf32>
    %442 = arith.subf %438, %372 : vector<4x32xf32>
    %443 = arith.mulf %384, %442 : vector<4x32xf32>
    %444 = arith.addf %372, %443 : vector<4x32xf32>
    %c5_137 = arith.constant 5 : index
    %c0_138 = arith.constant 0 : index
    %c0_139 = arith.constant 0 : index
    %445 = vector.load %arg16[%c5_137, %c0_138, %c0_139] : memref<8x4x32xf32, #tpu.memory_space<vmem>>, vector<1x4x32xf32>
    %446 = vector.shape_cast %445 : vector<1x4x32xf32> to vector<4x32xf32>
    %447 = vector.shape_cast %441 : vector<4x32xf32> to vector<1x4x32xf32>
    tpu.vector_store %arg16[%c5_137, %c0_138, %c0_139], %447 {strides = array<i32>} : memref<8x4x32xf32, #tpu.memory_space<vmem>>, vector<1x4x32xf32>,
    %c2_140 = arith.constant 2 : index
    %c0_141 = arith.constant 0 : index
    %c0_142 = arith.constant 0 : index
    %448 = vector.load %arg17[%c2_140, %c0_141, %c0_142] : memref<8x4x32xf32, #tpu.memory_space<vmem>>, vector<1x4x32xf32>
    %449 = vector.shape_cast %448 : vector<1x4x32xf32> to vector<4x32xf32>
    %450 = vector.shape_cast %444 : vector<4x32xf32> to vector<1x4x32xf32>
    tpu.vector_store %arg17[%c2_140, %c0_141, %c0_142], %450 {strides = array<i32>} : memref<8x4x32xf32, #tpu.memory_space<vmem>>, vector<1x4x32xf32>,
    %c24_143 = arith.constant 24 : index
    %c0_144 = arith.constant 0 : index
    %451 = vector.load %arg14[%c24_143, %c0_144] : memref<32x96xf32, #tpu.memory_space<vmem>>, vector<4x96xf32>
    %c4_145 = arith.constant 4 : index
    %c0_146 = arith.constant 0 : index
    %452 = vector.load %arg15[%c4_145, %c0_146] : memref<32x96xf32, #tpu.memory_space<vmem>>, vector<4x96xf32>
    %c6_147 = arith.constant 6 : index
    %c0_148 = arith.constant 0 : index
    %c0_149 = arith.constant 0 : index
    %453 = vector.load %arg1[%c6_147, %c0_148, %c0_149] : memref<8x4x32xf32, #tpu.memory_space<vmem>>, vector<1x4x32xf32>
    %454 = vector.shape_cast %453 : vector<1x4x32xf32> to vector<4x32xf32>
    %c1_150 = arith.constant 1 : index
    %c0_151 = arith.constant 0 : index
    %c0_152 = arith.constant 0 : index
    %455 = vector.load %arg1[%c1_150, %c0_151, %c0_152] : memref<8x4x32xf32, #tpu.memory_space<vmem>>, vector<1x4x32xf32>
    %456 = vector.shape_cast %455 : vector<1x4x32xf32> to vector<4x32xf32>
    %cst_153 = arith.constant dense<0.000000e+00> : vector<4x96xf32>
    %457 = tpu.matmul %441, %13, %cst_153 {dimension_numbers = #tpu.dot_dimension_numbers<[1], [0], [0], [1], [0, 0, 1, 1], [], []>} : vector<4x32xf32>, vector<32x96xf32>, vector<4x96xf32> -> vector<4x96xf32>
    %458 = vector.extract_strided_slice %451 {offsets = [0, 0], sizes = [4, 32], strides = [1, 1]} : vector<4x96xf32> to vector<4x32xf32>
    %459 = vector.extract_strided_slice %457 {offsets = [0, 0], sizes = [4, 32], strides = [1, 1]} : vector<4x96xf32> to vector<4x32xf32>
    %460 = arith.addf %458, %459 : vector<4x32xf32>
    %461 = arith.negf %460 : vector<4x32xf32>
    %462 = math.exp %461 : vector<4x32xf32>
    %cst_154 = arith.constant 1.000000e+00 : f32
    %463 = vector.broadcast %cst_154 : f32 to vector<4x32xf32>
    %464 = arith.addf %463, %462 : vector<4x32xf32>
    %465 = arith.divf %463, %464 : vector<4x32xf32>
    %466 = vector.extract_strided_slice %451 {offsets = [0, 32], sizes = [4, 32], strides = [1, 1]} : vector<4x96xf32> to vector<4x32xf32>
    %467 = vector.extract_strided_slice %457 {offsets = [0, 32], sizes = [4, 32], strides = [1, 1]} : vector<4x96xf32> to vector<4x32xf32>
    %468 = arith.addf %466, %467 : vector<4x32xf32>
    %469 = arith.negf %468 : vector<4x32xf32>
    %470 = math.exp %469 : vector<4x32xf32>
    %cst_155 = arith.constant 1.000000e+00 : f32
    %471 = vector.broadcast %cst_155 : f32 to vector<4x32xf32>
    %472 = arith.addf %471, %470 : vector<4x32xf32>
    %473 = arith.divf %471, %472 : vector<4x32xf32>
    %474 = vector.extract_strided_slice %451 {offsets = [0, 64], sizes = [4, 32], strides = [1, 1]} : vector<4x96xf32> to vector<4x32xf32>
    %475 = vector.extract_strided_slice %457 {offsets = [0, 64], sizes = [4, 32], strides = [1, 1]} : vector<4x96xf32> to vector<4x32xf32>
    %476 = vector.broadcast %15 : vector<1x32xf32> to vector<4x32xf32>
    %477 = arith.addf %475, %476 : vector<4x32xf32>
    %478 = arith.mulf %465, %477 : vector<4x32xf32>
    %479 = arith.addf %474, %478 : vector<4x32xf32>
    %480 = math.tanh %479 : vector<4x32xf32>
    %481 = arith.subf %441, %480 : vector<4x32xf32>
    %482 = arith.mulf %473, %481 : vector<4x32xf32>
    %483 = arith.addf %480, %482 : vector<4x32xf32>
    %cst_156 = arith.constant dense<0.000000e+00> : vector<4x96xf32>
    %484 = tpu.matmul %444, %14, %cst_156 {dimension_numbers = #tpu.dot_dimension_numbers<[1], [0], [0], [1], [0, 0, 1, 1], [], []>} : vector<4x32xf32>, vector<32x96xf32>, vector<4x96xf32> -> vector<4x96xf32>
    %485 = vector.extract_strided_slice %452 {offsets = [0, 0], sizes = [4, 32], strides = [1, 1]} : vector<4x96xf32> to vector<4x32xf32>
    %486 = vector.extract_strided_slice %484 {offsets = [0, 0], sizes = [4, 32], strides = [1, 1]} : vector<4x96xf32> to vector<4x32xf32>
    %487 = arith.addf %485, %486 : vector<4x32xf32>
    %488 = arith.negf %487 : vector<4x32xf32>
    %489 = math.exp %488 : vector<4x32xf32>
    %cst_157 = arith.constant 1.000000e+00 : f32
    %490 = vector.broadcast %cst_157 : f32 to vector<4x32xf32>
    %491 = arith.addf %490, %489 : vector<4x32xf32>
    %492 = arith.divf %490, %491 : vector<4x32xf32>
    %493 = vector.extract_strided_slice %452 {offsets = [0, 32], sizes = [4, 32], strides = [1, 1]} : vector<4x96xf32> to vector<4x32xf32>
    %494 = vector.extract_strided_slice %484 {offsets = [0, 32], sizes = [4, 32], strides = [1, 1]} : vector<4x96xf32> to vector<4x32xf32>
    %495 = arith.addf %493, %494 : vector<4x32xf32>
    %496 = arith.negf %495 : vector<4x32xf32>
    %497 = math.exp %496 : vector<4x32xf32>
    %cst_158 = arith.constant 1.000000e+00 : f32
    %498 = vector.broadcast %cst_158 : f32 to vector<4x32xf32>
    %499 = arith.addf %498, %497 : vector<4x32xf32>
    %500 = arith.divf %498, %499 : vector<4x32xf32>
    %501 = vector.extract_strided_slice %452 {offsets = [0, 64], sizes = [4, 32], strides = [1, 1]} : vector<4x96xf32> to vector<4x32xf32>
    %502 = vector.extract_strided_slice %484 {offsets = [0, 64], sizes = [4, 32], strides = [1, 1]} : vector<4x96xf32> to vector<4x32xf32>
    %503 = vector.broadcast %16 : vector<1x32xf32> to vector<4x32xf32>
    %504 = arith.addf %502, %503 : vector<4x32xf32>
    %505 = arith.mulf %492, %504 : vector<4x32xf32>
    %506 = arith.addf %501, %505 : vector<4x32xf32>
    %507 = math.tanh %506 : vector<4x32xf32>
    %508 = arith.subf %444, %507 : vector<4x32xf32>
    %509 = arith.mulf %500, %508 : vector<4x32xf32>
    %510 = arith.addf %507, %509 : vector<4x32xf32>
    %511 = arith.subf %483, %441 : vector<4x32xf32>
    %512 = arith.mulf %454, %511 : vector<4x32xf32>
    %513 = arith.addf %441, %512 : vector<4x32xf32>
    %514 = arith.subf %510, %444 : vector<4x32xf32>
    %515 = arith.mulf %456, %514 : vector<4x32xf32>
    %516 = arith.addf %444, %515 : vector<4x32xf32>
    %c6_159 = arith.constant 6 : index
    %c0_160 = arith.constant 0 : index
    %c0_161 = arith.constant 0 : index
    %517 = vector.load %arg16[%c6_159, %c0_160, %c0_161] : memref<8x4x32xf32, #tpu.memory_space<vmem>>, vector<1x4x32xf32>
    %518 = vector.shape_cast %517 : vector<1x4x32xf32> to vector<4x32xf32>
    %519 = vector.shape_cast %513 : vector<4x32xf32> to vector<1x4x32xf32>
    tpu.vector_store %arg16[%c6_159, %c0_160, %c0_161], %519 {strides = array<i32>} : memref<8x4x32xf32, #tpu.memory_space<vmem>>, vector<1x4x32xf32>,
    %c1_162 = arith.constant 1 : index
    %c0_163 = arith.constant 0 : index
    %c0_164 = arith.constant 0 : index
    %520 = vector.load %arg17[%c1_162, %c0_163, %c0_164] : memref<8x4x32xf32, #tpu.memory_space<vmem>>, vector<1x4x32xf32>
    %521 = vector.shape_cast %520 : vector<1x4x32xf32> to vector<4x32xf32>
    %522 = vector.shape_cast %516 : vector<4x32xf32> to vector<1x4x32xf32>
    tpu.vector_store %arg17[%c1_162, %c0_163, %c0_164], %522 {strides = array<i32>} : memref<8x4x32xf32, #tpu.memory_space<vmem>>, vector<1x4x32xf32>,
    %c28_165 = arith.constant 28 : index
    %c0_166 = arith.constant 0 : index
    %523 = vector.load %arg14[%c28_165, %c0_166] : memref<32x96xf32, #tpu.memory_space<vmem>>, vector<4x96xf32>
    %c0_167 = arith.constant 0 : index
    %c0_168 = arith.constant 0 : index
    %524 = vector.load %arg15[%c0_167, %c0_168] : memref<32x96xf32, #tpu.memory_space<vmem>>, vector<4x96xf32>
    %c7_169 = arith.constant 7 : index
    %c0_170 = arith.constant 0 : index
    %c0_171 = arith.constant 0 : index
    %525 = vector.load %arg1[%c7_169, %c0_170, %c0_171] : memref<8x4x32xf32, #tpu.memory_space<vmem>>, vector<1x4x32xf32>
    %526 = vector.shape_cast %525 : vector<1x4x32xf32> to vector<4x32xf32>
    %c0_172 = arith.constant 0 : index
    %c0_173 = arith.constant 0 : index
    %c0_174 = arith.constant 0 : index
    %527 = vector.load %arg1[%c0_172, %c0_173, %c0_174] : memref<8x4x32xf32, #tpu.memory_space<vmem>>, vector<1x4x32xf32>
    %528 = vector.shape_cast %527 : vector<1x4x32xf32> to vector<4x32xf32>
    %cst_175 = arith.constant dense<0.000000e+00> : vector<4x96xf32>
    %529 = tpu.matmul %513, %13, %cst_175 {dimension_numbers = #tpu.dot_dimension_numbers<[1], [0], [0], [1], [0, 0, 1, 1], [], []>} : vector<4x32xf32>, vector<32x96xf32>, vector<4x96xf32> -> vector<4x96xf32>
    %530 = vector.extract_strided_slice %523 {offsets = [0, 0], sizes = [4, 32], strides = [1, 1]} : vector<4x96xf32> to vector<4x32xf32>
    %531 = vector.extract_strided_slice %529 {offsets = [0, 0], sizes = [4, 32], strides = [1, 1]} : vector<4x96xf32> to vector<4x32xf32>
    %532 = arith.addf %530, %531 : vector<4x32xf32>
    %533 = arith.negf %532 : vector<4x32xf32>
    %534 = math.exp %533 : vector<4x32xf32>
    %cst_176 = arith.constant 1.000000e+00 : f32
    %535 = vector.broadcast %cst_176 : f32 to vector<4x32xf32>
    %536 = arith.addf %535, %534 : vector<4x32xf32>
    %537 = arith.divf %535, %536 : vector<4x32xf32>
    %538 = vector.extract_strided_slice %523 {offsets = [0, 32], sizes = [4, 32], strides = [1, 1]} : vector<4x96xf32> to vector<4x32xf32>
    %539 = vector.extract_strided_slice %529 {offsets = [0, 32], sizes = [4, 32], strides = [1, 1]} : vector<4x96xf32> to vector<4x32xf32>
    %540 = arith.addf %538, %539 : vector<4x32xf32>
    %541 = arith.negf %540 : vector<4x32xf32>
    %542 = math.exp %541 : vector<4x32xf32>
    %cst_177 = arith.constant 1.000000e+00 : f32
    %543 = vector.broadcast %cst_177 : f32 to vector<4x32xf32>
    %544 = arith.addf %543, %542 : vector<4x32xf32>
    %545 = arith.divf %543, %544 : vector<4x32xf32>
    %546 = vector.extract_strided_slice %523 {offsets = [0, 64], sizes = [4, 32], strides = [1, 1]} : vector<4x96xf32> to vector<4x32xf32>
    %547 = vector.extract_strided_slice %529 {offsets = [0, 64], sizes = [4, 32], strides = [1, 1]} : vector<4x96xf32> to vector<4x32xf32>
    %548 = vector.broadcast %15 : vector<1x32xf32> to vector<4x32xf32>
    %549 = arith.addf %547, %548 : vector<4x32xf32>
    %550 = arith.mulf %537, %549 : vector<4x32xf32>
    %551 = arith.addf %546, %550 : vector<4x32xf32>
    %552 = math.tanh %551 : vector<4x32xf32>
    %553 = arith.subf %513, %552 : vector<4x32xf32>
    %554 = arith.mulf %545, %553 : vector<4x32xf32>
    %555 = arith.addf %552, %554 : vector<4x32xf32>
    %cst_178 = arith.constant dense<0.000000e+00> : vector<4x96xf32>
    %556 = tpu.matmul %516, %14, %cst_178 {dimension_numbers = #tpu.dot_dimension_numbers<[1], [0], [0], [1], [0, 0, 1, 1], [], []>} : vector<4x32xf32>, vector<32x96xf32>, vector<4x96xf32> -> vector<4x96xf32>
    %557 = vector.extract_strided_slice %524 {offsets = [0, 0], sizes = [4, 32], strides = [1, 1]} : vector<4x96xf32> to vector<4x32xf32>
    %558 = vector.extract_strided_slice %556 {offsets = [0, 0], sizes = [4, 32], strides = [1, 1]} : vector<4x96xf32> to vector<4x32xf32>
    %559 = arith.addf %557, %558 : vector<4x32xf32>
    %560 = arith.negf %559 : vector<4x32xf32>
    %561 = math.exp %560 : vector<4x32xf32>
    %cst_179 = arith.constant 1.000000e+00 : f32
    %562 = vector.broadcast %cst_179 : f32 to vector<4x32xf32>
    %563 = arith.addf %562, %561 : vector<4x32xf32>
    %564 = arith.divf %562, %563 : vector<4x32xf32>
    %565 = vector.extract_strided_slice %524 {offsets = [0, 32], sizes = [4, 32], strides = [1, 1]} : vector<4x96xf32> to vector<4x32xf32>
    %566 = vector.extract_strided_slice %556 {offsets = [0, 32], sizes = [4, 32], strides = [1, 1]} : vector<4x96xf32> to vector<4x32xf32>
    %567 = arith.addf %565, %566 : vector<4x32xf32>
    %568 = arith.negf %567 : vector<4x32xf32>
    %569 = math.exp %568 : vector<4x32xf32>
    %cst_180 = arith.constant 1.000000e+00 : f32
    %570 = vector.broadcast %cst_180 : f32 to vector<4x32xf32>
    %571 = arith.addf %570, %569 : vector<4x32xf32>
    %572 = arith.divf %570, %571 : vector<4x32xf32>
    %573 = vector.extract_strided_slice %524 {offsets = [0, 64], sizes = [4, 32], strides = [1, 1]} : vector<4x96xf32> to vector<4x32xf32>
    %574 = vector.extract_strided_slice %556 {offsets = [0, 64], sizes = [4, 32], strides = [1, 1]} : vector<4x96xf32> to vector<4x32xf32>
    %575 = vector.broadcast %16 : vector<1x32xf32> to vector<4x32xf32>
    %576 = arith.addf %574, %575 : vector<4x32xf32>
    %577 = arith.mulf %564, %576 : vector<4x32xf32>
    %578 = arith.addf %573, %577 : vector<4x32xf32>
    %579 = math.tanh %578 : vector<4x32xf32>
    %580 = arith.subf %516, %579 : vector<4x32xf32>
    %581 = arith.mulf %572, %580 : vector<4x32xf32>
    %582 = arith.addf %579, %581 : vector<4x32xf32>
    %583 = arith.subf %555, %513 : vector<4x32xf32>
    %584 = arith.mulf %526, %583 : vector<4x32xf32>
    %585 = arith.addf %513, %584 : vector<4x32xf32>
    %586 = arith.subf %582, %516 : vector<4x32xf32>
    %587 = arith.mulf %528, %586 : vector<4x32xf32>
    %588 = arith.addf %516, %587 : vector<4x32xf32>
    %c7_181 = arith.constant 7 : index
    %c0_182 = arith.constant 0 : index
    %c0_183 = arith.constant 0 : index
    %589 = vector.load %arg16[%c7_181, %c0_182, %c0_183] : memref<8x4x32xf32, #tpu.memory_space<vmem>>, vector<1x4x32xf32>
    %590 = vector.shape_cast %589 : vector<1x4x32xf32> to vector<4x32xf32>
    %591 = vector.shape_cast %585 : vector<4x32xf32> to vector<1x4x32xf32>
    tpu.vector_store %arg16[%c7_181, %c0_182, %c0_183], %591 {strides = array<i32>} : memref<8x4x32xf32, #tpu.memory_space<vmem>>, vector<1x4x32xf32>,
    %c0_184 = arith.constant 0 : index
    %c0_185 = arith.constant 0 : index
    %c0_186 = arith.constant 0 : index
    %592 = vector.load %arg17[%c0_184, %c0_185, %c0_186] : memref<8x4x32xf32, #tpu.memory_space<vmem>>, vector<1x4x32xf32>
    %593 = vector.shape_cast %592 : vector<1x4x32xf32> to vector<4x32xf32>
    %594 = vector.shape_cast %588 : vector<4x32xf32> to vector<1x4x32xf32>
    tpu.vector_store %arg17[%c0_184, %c0_185, %c0_186], %594 {strides = array<i32>} : memref<8x4x32xf32, #tpu.memory_space<vmem>>, vector<1x4x32xf32>,
    %c0_187 = arith.constant 0 : index
    %c0_188 = arith.constant 0 : index
    %c0_189 = arith.constant 0 : index
    %595 = vector.load %arg1[%c0_187, %c0_188, %c0_189] : memref<8x4x32xf32, #tpu.memory_space<vmem>>, vector<8x4x32xf32>
    %c0_190 = arith.constant 0 : index
    %c0_191 = arith.constant 0 : index
    %c0_192 = arith.constant 0 : index
    %596 = vector.load %arg16[%c0_190, %c0_191, %c0_192] : memref<8x4x32xf32, #tpu.memory_space<vmem>>, vector<8x4x32xf32>
    %c0_193 = arith.constant 0 : index
    %c0_194 = arith.constant 0 : index
    %c0_195 = arith.constant 0 : index
    %597 = vector.load %arg17[%c0_193, %c0_194, %c0_195] : memref<8x4x32xf32, #tpu.memory_space<vmem>>, vector<8x4x32xf32>
    %598 = arith.addf %596, %597 : vector<8x4x32xf32>
    %599 = arith.mulf %595, %598 : vector<8x4x32xf32>
    %c0_196 = arith.constant 0 : index
    %c0_197 = arith.constant 0 : index
    %c0_198 = arith.constant 0 : index
    %600 = vector.load %arg12[%c0_196, %c0_197, %c0_198] : memref<8x4x32xf32, #tpu.memory_space<vmem>>, vector<8x4x32xf32>
    tpu.vector_store %arg12[%c0_196, %c0_197, %c0_198], %599 {strides = array<i32>} : memref<8x4x32xf32, #tpu.memory_space<vmem>>, vector<8x4x32xf32>,
    %601 = tpu.concatenate %585, %588 in 1 : vector<4x32xf32>, vector<4x32xf32> -> vector<4x64xf32>
    %c0_199 = arith.constant 0 : index
    %c0_200 = arith.constant 0 : index
    %602 = vector.load %arg10[%c0_199, %c0_200] : memref<64x32xf32, #tpu.memory_space<vmem>>, vector<64x32xf32>
    %cst_201 = arith.constant dense<0.000000e+00> : vector<4x32xf32>
    %603 = tpu.matmul %601, %602, %cst_201 {dimension_numbers = #tpu.dot_dimension_numbers<[1], [0], [0], [1], [0, 0, 1, 1], [], []>} : vector<4x64xf32>, vector<64x32xf32>, vector<4x32xf32> -> vector<4x32xf32>
    %c0_202 = arith.constant 0 : index
    %c0_203 = arith.constant 0 : index
    %604 = vector.load %arg11[%c0_202, %c0_203] : memref<1x32xf32, #tpu.memory_space<vmem>>, vector<1x32xf32>
    %605 = vector.broadcast %604 : vector<1x32xf32> to vector<4x32xf32>
    %606 = arith.addf %603, %605 : vector<4x32xf32>
    %607 = math.tanh %606 : vector<4x32xf32>
    %c0_204 = arith.constant 0 : index
    %c0_205 = arith.constant 0 : index
    %608 = vector.load %arg13[%c0_204, %c0_205] : memref<4x32xf32, #tpu.memory_space<vmem>>, vector<4x32xf32>
    tpu.vector_store %arg13[%c0_204, %c0_205], %607 {strides = array<i32>} : memref<4x32xf32, #tpu.memory_space<vmem>>, vector<4x32xf32>,
    return
  }
}

</mosaic_0001>

<bundles_post_ra>
// kernel: encoder_rnn_forward.1
= control target key start
LH: loop header
LB: loop body
LE: loop exit
PB: predicated region body
PF: predicated region fallthrough
CT: control target
= control target key end

     0   :  { %19 = vsyncpa [#allocation7], 0  ;;  %vm57_vm0 = vcmask 261120   ;;  %v1840_v15 = vmov 0.0   ;;  %s2469_s0 = inlined_call_operand.vmem [shape: f32[32,32], index: 0, kind: input, shape index: {}]   ;;  %s2470_s1 = inlined_call_operand.vmem [shape: f32[8,4,32], index: 1, kind: input, shape index: {}]   ;;  %s2471_s2 = inlined_call_operand.vmem [shape: f32[32,96], index: 2, kind: input, shape index: {}]   ;;  %s2472_s3 = inlined_call_operand.vmem [shape: f32[32,96], index: 3, kind: input, shape index: {}]   ;;  %s2473_s4 = inlined_call_operand.vmem [shape: f32[1,96], index: 4, kind: input, shape index: {}]   ;;  %s2474_s5 = inlined_call_operand.vmem [shape: f32[1,32], index: 5, kind: input, shape index: {}]   ;;  %s2475_s6 = inlined_call_operand.vmem [shape: f32[32,96], index: 6, kind: input, shape index: {}]   ;;  %s2476_s7 = inlined_call_operand.vmem [shape: f32[32,96], index: 7, kind: input, shape index: {}]   ;;  %s2477_s8 = inlined_call_operand.vmem [shape: f32[1,96], index: 8, kind: input, shape index: {}]   ;;  %s2478_s9 = inlined_call_operand.vmem [shape: f32[1,32], index: 9, kind: input, shape index: {}]   ;;  %s2479_s10 = inlined_call_operand.vmem [shape: f32[64,32], index: 10, kind: input, shape index: {}]   ;;  %s2480_s11 = inlined_call_operand.vmem [shape: f32[1,32], index: 11, kind: input, shape index: {}]   ;;  %s2481_s12 = inlined_call_operand.hbm [shape: f32[8,4,32], index: 12, kind: output, shape index: {0}]   ;;  %s2482_s13 = inlined_call_operand.hbm [shape: f32[4,32], index: 13, kind: output, shape index: {1}]  }
   0x1   :  { %v52_v0 = vld [vmem:[%s2471_s2 + $0x18] sm:$0xff]  ;;  %v51_v2 = vld [vmem:[%s2471_s2 + $0x10] sm:$0xff]  ;;  %v50_v4 = vld [vmem:[%s2471_s2 + $0x8] sm:$0xff] }
   0x2   :  { %v1923_v1 = vld [vmem:[%s2476_s7 + $0x18] sm:$0xff]  ;;  %1674 = vmatpush.msra.mxu1 %v52_v0  ;;  %v1932_v3 = vld [vmem:[%s2476_s7 + $0x10] sm:$0xff]  ;;  %v1940_v5 = vld [vmem:[%s2476_s7 + $0x8] sm:$0xff]  ;;  %82 = vmatpush.msra.mxu0 %v52_v0 }
   0x3   :  { %243 = vmatpush.msra.mxu3 %v1923_v1  ;;  %v1946_v6 = vld [vmem:[%s2472_s3 + $0x18] sm:$0xff]  ;;  %v49_v7 = vld [vmem:[%s2471_s2] sm:$0xff]  ;;  %v1960_v9 = vld [vmem:[%s2472_s3 + $0x10] sm:$0xff] }
   0x4   :  { %1675 = vmatpush.msra.mxu1 %v51_v2  ;;  %v1954_v8 = vld [vmem:[%s2476_s7] sm:$0xff]  ;;  %175 = vmatpush.msra.mxu2 %v1946_v6  ;;  %v1966_v10 = vld [vmem:[%s2469_s0 + $0x18] sm:$0xff]  ;;  %v1975_v12 = vld [vmem:[%s2472_s3 + $0x8] sm:$0xff] }
   0x5   :  { %244 = vmatpush.msra.mxu3 %v1932_v3  ;;  %83 = vmatpush.msra.mxu0 %v51_v2  ;;  %v107_v11 = vld [vmem:[%s2475_s6 + $0x18] sm:$0xff]  ;;  %v1685_v13 = vld [vmem:[%s2478_s9] ss:$0 sm:$0xff]  ;;  %v106_v14 = vld [vmem:[%s2475_s6 + $0x10] sm:$0xff] }
   0x6   :  { %1676 = vmatpush.msra.mxu1 %v50_v4  ;;  %176 = vmatpush.msra.mxu2 %v1960_v9  ;;  %v1989_v16 = vld [vmem:[%s2472_s3] sm:$0xff] }
   0x7   :  { %245 = vmatpush.msra.mxu3 %v1940_v5  ;;  %84 = vmatpush.msra.mxu0 %v50_v4 }
   0x8   :  { %1677 = vmatpush.msra.mxu1 %v49_v7  ;;  %177 = vmatpush.msra.mxu2 %v1975_v12 }
   0x9   :  { %246 = vmatpush.msra.mxu3 %v1954_v8  ;;  %1624 = vmatmul.msk.f32.vlgmr.msra.gmra.mxu1 %vm57_vm0, %v1966_v10 }
   0xa   :  { %247 = vmatmul.f32.vlgmr.msra.gmra.mxu3 %v1840_v15  ;;  %124 = vmatpush.msrb.mxu1 %v107_v11 }
   0xb   :  { %20 = vsyncpa [#allocation9], 0  ;;  %v105_v17 = vld [vmem:[%s2475_s6 + $0x8] sm:$0xff]  ;;  %s1841_s22 = smov 64   ;;  %85 = vmatpush.msra.mxu0 %v49_v7  ;;  %178 = vmatpush.msra.mxu2 %v1989_v16  ;;  %v45_v18 = vld [vmem:[%s2469_s0] sm:$0xff]  ;;  %vm99_vm1 = vcmask 785408  }
   0xc   :  { %273 = vrot.lane.b32.xlu0 %v1685_v13, %s1841_s22  ;;  %125 = vmatpush.msrb.mxu1 %v106_v14  ;;  %v104_v19 = vld [vmem:[%s2475_s6] sm:$0xff]  ;;  %v46_v21 = vld [vmem:[%s2469_s0 + $0x8] sm:$0xff]  ;;  %v47_v22 = vld [vmem:[%s2469_s0 + $0x10] sm:$0xff]  ;;  %vm311_vm10 = vcmask 257024   ;;  %s1845_s0 = smov 4   ;;  %s1846_s7 = smov [#allocation8]  }
   0xd   :  { %179 = vmatmul.f32.vlgmr.msra.gmra.mxu2 %v1840_v15  ;;  %1621 = vmatmul.msk.f32.vlgmr.msra.gmra.mxu0 %vm57_vm0, %v45_v18  ;;  %v1686_v20 = vld [vmem:[%s2474_s5] ss:$0 sm:$0xff]  ;;  %s1844_s5 = smov [#allocation6]   ;;  %s1605_s30 = sshll.u32 %s1846_s7, 4  ;;  %s1606_s30 = int_to_ptr.vmem [resolvable:$true] %s1605_s30 }
   0xe   :  { %126 = vmatpush.msrb.mxu1 %v105_v17  ;;  %406 = vmatpush.msrb.mxu3 %v1923_v1  ;;  %v2056_v23 = vld [vmem:[%s2473_s4] ss:$0 sm:$0xff]  ;;  %s1842_s4 = smov 96   ;;  %s1591_s6 = sshll.u32 %s1844_s5, 4  ;;  %s1592_s6 = int_to_ptr.vmem [resolvable:$true] %s1591_s6 }
   0xf   :  { %336 = vmatpush.msrb.mxu2 %v1946_v6  ;;  %844 = vmatpush.msrb.mxu0 %v1946_v6  ;;  %v1688_v30 = vld [vmem:[%s2477_s8] ss:$0 sm:$0xff]  ;;  %s1843_s8 = smov 32   ;;  %s1607_s15 = sshll.u32 %s2482_s13, 4  ;;  %s1608_s15 = int_to_ptr.hbm [resolvable:$true] %s1607_s15 }
  0x10   :  { %127 = vmatpush.msrb.mxu1 %v104_v19  ;;  %407 = vmatpush.msrb.mxu3 %v1932_v3 }
  0x11   :  { %1625 = vmatmul.msk.f32.vlgmr.msrb.gmra.mxu1 %vm57_vm0, %v45_v18  ;;  %337 = vmatpush.msrb.mxu2 %v1960_v9 }
  0x12   :  { %408 = vmatpush.msrb.mxu3 %v1940_v5  ;;  %914 = vmatpush.msra.mxu1 %v1923_v1 }
  0x13   :  { %338 = vmatpush.msrb.mxu2 %v1975_v12  ;;  %845 = vmatpush.msrb.mxu0 %v1960_v9 }
  0x14   :  { %205 = vrot.lane.b32.xlu0 %v1686_v20, %s1841_s22  ;;  %409 = vmatpush.msrb.mxu3 %v1954_v8 }
  0x15   :  { %915 = vmatpush.msra.mxu1 %v1932_v3  ;;  %339 = vmatpush.msrb.mxu2 %v1989_v16 }
  0x16   :  { %576 = vmatpush.msra.mxu3 %v1923_v1  ;;  %1622 = vmatmul.msk.f32.gmra.mxu0 %vm57_vm0, %v46_v21 }
  0x17   :  { %506 = vmatpush.msra.mxu2 %v1946_v6  ;;  %916 = vmatpush.msra.mxu1 %v1940_v5 }
  0x18   :  { %577 = vmatpush.msra.mxu3 %v1932_v3  ;;  %846 = vmatpush.msrb.mxu0 %v1975_v12 }
  0x19   :  { %507 = vmatpush.msra.mxu2 %v1960_v9  ;;  %1626 = vmatmul.msk.f32.gmra.mxu1 %vm57_vm0, %v46_v21 }
  0x1a   :  { %578 = vmatpush.msra.mxu3 %v1940_v5  ;;  %917 = vmatpush.msra.mxu1 %v1954_v8 }
  0x1b   :  { %508 = vmatpush.msra.mxu2 %v1975_v12  ;;  %847 = vmatpush.msrb.mxu0 %v1989_v16 }
  0x1c   :  { %579 = vmatpush.msra.mxu3 %v1954_v8  ;;  %1250 = vmatpush.msrb.mxu1 %v1923_v1 }
  0x1d   :  { %509 = vmatpush.msra.mxu2 %v1989_v16  ;;  %1180 = vmatpush.msra.mxu0 %v1946_v6 }
  0x1e   :  { %1623 = vmatmul.msk.f32.gmra.mxu0 %vm57_vm0, %v47_v22  ;;  %1251 = vmatpush.msrb.mxu1 %v1932_v3 }
  0x1f   :  { %1181 = vmatpush.msra.mxu0 %v1960_v9 }
  0x20   :  { %1252 = vmatpush.msrb.mxu1 %v1940_v5 }
  0x21   :  { %1627 = vmatmul.msk.f32.gmra.mxu1 %vm57_vm0, %v47_v22  ;;  %1182 = vmatpush.msra.mxu0 %v1975_v12 }
  0x22   :  { %1253 = vmatpush.msrb.mxu1 %v1954_v8 }
  0x23   :  { %1183 = vmatpush.msra.mxu0 %v1989_v16 }
  0x29   :  { %1628 = vmatmul.msk.f32.gmra.mxu1 %vm57_vm0, %v1966_v10 }
  0x7e   :  { %v2058_v25 = vpop.permute.xlu0 %273 }
  0x86   :  { %v96_v24 = vpop.f32.mrf.mxu1  ;;  %v2069_v34 = vpop.permute.xlu0 %205 }
  0x87   :  { %v97_v26 = vadd.f32 %v2056_v23, %v96_v24 }
  0x89   :  { %103 = vst.msk [vmem:[#allocation2 + $0x18] sm:$0xff] %vm99_vm1, %v97_v26 }
  0x8a   :  { %v87_v27 = vpop.f32.mrf.mxu0 }
  0x8b   :  { %v88_v28 = vadd.f32 %v2056_v23, %v87_v27 }
  0x8d   :  { %v248_v29 = vpop.f32.mrf.mxu3  ;;  %100 = vst.msk [vmem:[#allocation2] sm:$0xff] %vm99_vm1, %v88_v28 }
  0x8e   :  { %v276_v31 = vadd.f32 %v2058_v25, %v248_v29  ;;  %v129_v32 = vpop.f32.mrf.mxu1 }
  0x8f   :  { %v130_v33 = vadd.f32 %v1688_v30, %v129_v32 }
  0x90   :  { %278 = vrot.lane.b32.xlu1 %v276_v31, %s1841_s22  ;;  %v180_v35 = vpop.f32.mrf.mxu2 }
  0x91   :  { %141 = vst.msk [vmem:[#allocation3] sm:$0xff] %vm99_vm1, %v130_v33  ;;  %v208_v36 = vadd.f32 %v2069_v34, %v180_v35 }
  0x94   :  { %v155_v46 = vld [vmem:[#allocation2] sm:$0xf] }
  0x95   :  { %v183_v47 = vadd.f32 %v180_v35, %v155_v46 }
  0x96   :  { %v132_v37 = vpop.f32.mrf.mxu1 }
  0x97   :  { %v133_v38 = vadd.f32 %v1688_v30, %v132_v37  ;;  %v1630_v48 = vmul.f32 -1.442695, %v183_v47 }
  0x98   :  { %210 = vrot.lane.b32.xlu1 %v208_v36, %s1841_s22 }
  0x99   :  { %142 = vst.msk [vmem:[#allocation3 + $0x8] sm:$0xff] %vm99_vm1, %v133_v38 }
  0x9e   :  { %v135_v39 = vpop.f32.mrf.mxu1 }
  0x9f   :  { %v136_v40 = vadd.f32 %v1688_v30, %v135_v39 }
  0xa1   :  { %143 = vst.msk [vmem:[#allocation3 + $0x10] sm:$0xff] %vm99_vm1, %v136_v40  ;;  %v1629_v40 = vld [vmem:[%s2470_s1 + $0x1c] sm:$0xf] }
  0xa6   :  { %v138_v41 = vpop.f32.mrf.mxu1 }
  0xa7   :  { %v139_v42 = vadd.f32 %v1688_v30, %v138_v41 }
  0xa9   :  { %144 = vst.msk [vmem:[#allocation3 + $0x18] sm:$0xff] %vm99_vm1, %v139_v42 }
  0xb0   :  { %v156_v43 = vld [vmem:[#allocation3 + $0x1c] sm:$0xf] }
  0xb1   :  { %v251_v44 = vadd.f32 %v248_v29, %v156_v43 }
  0xb3   :  { %v1631_v45 = vmul.f32 -1.442695, %v251_v44 }
  0xb5   :  { %1690 = vpow2.f32 %v1631_v45 }
  0xb6   :  { %1692 = vpow2.f32 %v1630_v48 }
  0xbb   :  { %v1691_v49 = vpop.eup %1690 }
  0xbc   :  { %v255_v50 = vadd.f32 1.0, %v1691_v49  ;;  %v1693_v51 = vpop.eup %1692 }
  0xbd   :  { %v187_v52 = vadd.f32 1.0, %v1693_v51 }
  0xbe   :  { %1694 = vrcp.f32 %v255_v50  ;;  %v267_v61 = vand.u32 2147483648, %v255_v50  ;;  %vm261_vm3 = vweird.f32 %v255_v50  ;;  %v265_v62 = vand.u32 2147483647, %v255_v50 }
  0xbf   :  { %1696 = vrcp.f32 %v187_v52  ;;  %vm193_vm6 = vweird.f32 %v187_v52  ;;  %v199_v10 = vand.u32 2147483648, %v187_v52  ;;  %v197_v14 = vand.u32 2147483647, %v187_v52 }
  0xc0   :  { %v268_v2 = vor.u32 1.1754944e-38, %v267_v61  ;;  %vm266_vm5 = vcmp.eq.f32.partialorder %v265_v62, 8.507059e+37 }
  0xc1   :  { %v200_v15 = vor.u32 1.1754944e-38, %v199_v10  ;;  %vm198_vm9 = vcmp.eq.f32.partialorder %v197_v14, 8.507059e+37 }
  0xc4   :  { %v1695_v53 = vpop.eup %1694 }
  0xc5   :  { %v257_v54 = vmul.f32 %v1695_v53, %v255_v50  ;;  %v1697_v56 = vpop.eup %1696  ;;  %vm262_vm2 = vweird.f32 %v1695_v53  ;;  %v316_v50 = vld [vmem:[#allocation3 + $0x18] sm:$0xf] }
  0xc6   :  { %v189_v58 = vmul.f32 %v1697_v56, %v187_v52  ;;  %vm263_vm4 = vmor %vm261_vm3, %vm262_vm2  ;;  %vm194_vm7 = vweird.f32 %v1697_v56 }
  0xc7   :  { %v258_v55 = vsub.f32 1.0, %v257_v54  ;;  %vm195_vm8 = vmor %vm193_vm6, %vm194_vm7 }
  0xc8   :  { %v190_v60 = vsub.f32 1.0, %v189_v58 }
  0xc9   :  { %v259_v57 = vmul.f32 %v1695_v53, %v258_v55 }
  0xca   :  { %v191_v0 = vmul.f32 %v1697_v56, %v190_v60 }
  0xcb   :  { %v260_v59 = vadd.f32 %v1695_v53, %v259_v57 }
  0xcc   :  { %v192_v13 = vadd.f32 %v1697_v56, %v191_v0 }
  0xcd   :  { %v264_v63 = vsel %vm263_vm4, %v1695_v53, %v260_v59  ;;  %v315_v53 = vld [vmem:[#allocation2 + $0x4] sm:$0xf] }
  0xce   :  { %v269_v7 = vsel %vm266_vm5, %v268_v2, %v264_v63  ;;  %v196_v17 = vsel %vm195_vm8, %v1697_v56, %v192_v13 }
  0xcf   :  { %v201_v19 = vsel %vm198_vm9, %v200_v15, %v196_v17 }
 0x102   :  { %v279_v4 = vpop.permute.xlu1 %278 }
 0x103   :  { %v281_v11 = vmul.f32 %v279_v4, %v269_v7 }
 0x105   :  { %283 = vrot.lane.b32.xlu2 %v281_v11, %s1841_s22 }
 0x10a   :  { %v211_v18 = vpop.permute.xlu1 %210 }
 0x10b   :  { %v213_v20 = vmul.f32 %v211_v18, %v201_v19 }
 0x10d   :  { %215 = vrot.lane.b32.xlu2 %v213_v20, %s1841_s22 }
 0x15f   :  { %v284_v21 = vpop.permute.xlu2 %283 }
 0x160   :  { %v286_v22 = vadd.f32 %v284_v21, %v156_v43  ;;  %v157_v43 = vld [vmem:[%s2470_s1] sm:$0xf] }
 0x162   :  { %1698 = vtanh.f32 %v286_v22 }
 0x167   :  { %v216_v24 = vpop.permute.xlu2 %215 }
 0x168   :  { %v1699_v26 = vpop.eup %1698  ;;  %v218_v27 = vadd.f32 %v216_v24, %v155_v46 }
 0x169   :  { %v288_v28 = vsub.f32 0.0, %v1699_v26 }
 0x16a   :  { %1700 = vtanh.f32 %v218_v27 }
 0x16b   :  { %290 = vrot.lane.b32.xlu0 %v288_v28, %s1842_s4 }
 0x170   :  { %v1701_v29 = vpop.eup %1700 }
 0x171   :  { %v220_v30 = vsub.f32 0.0, %v1701_v29 }
 0x173   :  { %222 = vrot.lane.b32.xlu1 %v220_v30, %s1842_s4 }
 0x1dd   :  { %v291_v31 = vpop.permute.xlu0 %290 }
 0x1de   :  { %v293_v32 = vmul.f32 %v291_v31, %v269_v7 }
 0x1e0   :  { %295 = vrot.lane.b32.xlu2 %v293_v32, %s1843_s8 }
 0x1e5   :  { %v223_v33 = vpop.permute.xlu1 %222 }
 0x1e6   :  { %v225_v35 = vmul.f32 %v223_v33, %v201_v19 }
 0x1e8   :  { %227 = vrot.lane.b32.xlu0 %v225_v35, %s1843_s8 }
 0x23a   :  { %v296_v36 = vpop.permute.xlu2 %295 }
 0x23b   :  { %v298_v37 = vadd.f32 %v1699_v26, %v296_v36 }
 0x23d   :  { %306 = vrot.lane.b32.xlu1 %v298_v37, %s1841_s22 }
 0x25a   :  { %v228_v38 = vpop.permute.xlu0 %227 }
 0x25b   :  { %v230_v39 = vadd.f32 %v1701_v29, %v228_v38 }
 0x25d   :  { %300 = vrot.lane.b32.xlu2 %v230_v39, %s1841_s22 }
 0x2af   :  { %v307_v41 = vpop.permute.xlu1 %306 }
 0x2b0   :  { %v2086_v42 = vmul.f32 %v1629_v40, %v307_v41 }
 0x2b2   :  { %314 = vst.msk [vmem:[#allocation5 + $0x1c] sm:$0xf] %vm311_vm10, %v2086_v42  ;;  %1636 = vmatmul.msk.f32.vlgmr.msrb.gmra.mxu3 %vm57_vm0, %v2086_v42 }
 0x2b3   :  { %746 = vmatpush.msrb.mxu3 %v1923_v1 }
 0x2b5   :  { %747 = vmatpush.msrb.mxu3 %v1932_v3 }
 0x2b7   :  { %v301_v44 = vpop.permute.xlu2 %300  ;;  %748 = vmatpush.msrb.mxu3 %v1940_v5 }
 0x2b8   :  { %v2098_v45 = vmul.f32 %v301_v44, %v157_v43 }
 0x2b9   :  { %749 = vmatpush.msrb.mxu3 %v1954_v8 }
 0x2ba   :  { %312 = vst.msk [vmem:[#allocation4] sm:$0xf] %vm311_vm10, %v2098_v45  ;;  %1634 = vmatmul.msk.f32.vlgmr.msrb.gmra.mxu2 %vm57_vm0, %v2098_v45 }
 0x2bb   :  { %676 = vmatpush.msrb.mxu2 %v1946_v6 }
 0x2bd   :  { %677 = vmatpush.msrb.mxu2 %v1960_v9 }
 0x2bf   :  { %678 = vmatpush.msrb.mxu2 %v1975_v12 }
 0x2c1   :  { %679 = vmatpush.msrb.mxu2 %v1989_v16 }
 0x335   :  { %v411_v46 = vpop.f32.mrf.mxu3 }
 0x336   :  { %v434_v47 = vadd.f32 %v411_v46, %v2058_v25  ;;  %v414_v51 = vadd.f32 %v411_v46, %v316_v50 }
 0x338   :  { %436 = vrot.lane.b32.xlu0 %v434_v47, %s1841_s22  ;;  %v1637_v52 = vmul.f32 -1.442695, %v414_v51 }
 0x33a   :  { %1702 = vpow2.f32 %v1637_v52 }
 0x33d   :  { %v341_v48 = vpop.f32.mrf.mxu2 }
 0x33e   :  { %v364_v49 = vadd.f32 %v341_v48, %v2069_v34  ;;  %v344_v54 = vadd.f32 %v341_v48, %v315_v53 }
 0x340   :  { %366 = vrot.lane.b32.xlu1 %v364_v49, %s1841_s22  ;;  %v1635_v55 = vmul.f32 -1.442695, %v344_v54  ;;  %v1703_v56 = vpop.eup %1702 }
 0x341   :  { %v418_v57 = vadd.f32 1.0, %v1703_v56 }
 0x342   :  { %1704 = vpow2.f32 %v1635_v55  ;;  %v1633_v55 = vld [vmem:[%s2470_s1 + $0x18] sm:$0xf] }
 0x343   :  { %1706 = vrcp.f32 %v418_v57  ;;  %v430_v10 = vand.u32 2147483648, %v418_v57  ;;  %vm424_vm12 = vweird.f32 %v418_v57  ;;  %v428_v11 = vand.u32 2147483647, %v418_v57 }
 0x345   :  { %v431_v15 = vor.u32 1.1754944e-38, %v430_v10  ;;  %vm429_vm14 = vcmp.eq.f32.partialorder %v428_v11, 8.507059e+37 }
 0x348   :  { %v1705_v58 = vpop.eup %1704 }
 0x349   :  { %v348_v59 = vadd.f32 1.0, %v1705_v58  ;;  %v1707_v60 = vpop.eup %1706 }
 0x34a   :  { %v420_v61 = vmul.f32 %v1707_v60, %v418_v57  ;;  %vm425_vm11 = vweird.f32 %v1707_v60 }
 0x34b   :  { %1708 = vrcp.f32 %v348_v59  ;;  %vm426_vm13 = vmor %vm424_vm12, %vm425_vm11  ;;  %v360_v21 = vand.u32 2147483648, %v348_v59  ;;  %vm354_vm2 = vweird.f32 %v348_v59  ;;  %v358_v22 = vand.u32 2147483647, %v348_v59 }
 0x34c   :  { %v421_v62 = vsub.f32 1.0, %v420_v61 }
 0x34d   :  { %v361_v26 = vor.u32 1.1754944e-38, %v360_v21  ;;  %vm359_vm4 = vcmp.eq.f32.partialorder %v358_v22, 8.507059e+37 }
 0x34e   :  { %v422_v0 = vmul.f32 %v1707_v60, %v421_v62  ;;  %v90_v62 = vpop.f32.mrf.mxu0 }
 0x350   :  { %v423_v4 = vadd.f32 %v1707_v60, %v422_v0 }
 0x351   :  { %v1709_v63 = vpop.eup %1708 }
 0x352   :  { %v350_v2 = vmul.f32 %v1709_v63, %v348_v59  ;;  %v427_v13 = vsel %vm426_vm13, %v1707_v60, %v423_v4  ;;  %vm355_vm15 = vweird.f32 %v1709_v63  ;;  %v1632_v59 = vld [vmem:[%s2470_s1 + $0x4] sm:$0xf] }
 0x353   :  { %v432_v18 = vsel %vm429_vm14, %v431_v15, %v427_v13  ;;  %vm356_vm3 = vmor %vm354_vm2, %vm355_vm15 }
 0x354   :  { %v351_v7 = vsub.f32 1.0, %v350_v2 }
 0x356   :  { %v352_v14 = vmul.f32 %v1709_v63, %v351_v7  ;;  %v486_v7 = vld [vmem:[#allocation3 + $0x14] sm:$0xf] }
 0x358   :  { %v353_v20 = vadd.f32 %v1709_v63, %v352_v14 }
 0x35a   :  { %v357_v24 = vsel %vm356_vm3, %v1709_v63, %v353_v20  ;;  %v91_v63 = vadd.f32 %v2056_v23, %v90_v62 }
 0x35b   :  { %v362_v28 = vsel %vm359_vm4, %v361_v26, %v357_v24 }
 0x35c   :  { %101 = vst.msk [vmem:[#allocation2 + $0x8] sm:$0xff] %vm99_vm1, %v91_v63 }
 0x3aa   :  { %v437_v17 = vpop.permute.xlu0 %436 }
 0x3ab   :  { %v439_v19 = vmul.f32 %v437_v17, %v432_v18 }
 0x3ad   :  { %441 = vrot.lane.b32.xlu2 %v439_v19, %s1841_s22 }
 0x3b2   :  { %v367_v27 = vpop.permute.xlu1 %366 }
 0x3b3   :  { %v369_v29 = vmul.f32 %v367_v27, %v362_v28 }
 0x3b5   :  { %371 = vrot.lane.b32.xlu0 %v369_v29, %s1841_s22 }
 0x407   :  { %v442_v30 = vpop.permute.xlu2 %441 }
 0x408   :  { %v444_v31 = vadd.f32 %v442_v30, %v316_v50  ;;  %v485_v30 = vld [vmem:[#allocation2 + $0x8] sm:$0xf] }
 0x40a   :  { %1710 = vtanh.f32 %v444_v31 }
 0x410   :  { %v1711_v32 = vpop.eup %1710 }
 0x411   :  { %447 = vrot.lane.b32.xlu1 %v1711_v32, %s1841_s22 }
 0x427   :  { %v372_v33 = vpop.permute.xlu0 %371 }
 0x428   :  { %v374_v35 = vadd.f32 %v372_v33, %v315_v53 }
 0x42a   :  { %1712 = vtanh.f32 %v374_v35 }
 0x430   :  { %v1713_v36 = vpop.eup %1712 }
 0x431   :  { %377 = vrot.lane.b32.xlu2 %v1713_v36, %s1841_s22 }
 0x483   :  { %v448_v37 = vpop.permute.xlu1 %447 }
 0x484   :  { %v450_v38 = vsub.f32 %v2086_v42, %v448_v37 }
 0x486   :  { %452 = vrot.lane.b32.xlu0 %v450_v38, %s1843_s8 }
 0x48b   :  { %v378_v39 = vpop.permute.xlu2 %377 }
 0x48c   :  { %v380_v40 = vsub.f32 %v2098_v45, %v378_v39 }
 0x48e   :  { %471 = vrot.lane.b32.xlu0 %v2086_v42, %s1841_s22  ;;  %382 = vrot.lane.b32.xlu1 %v380_v40, %s1843_s8 }
 0x4f8   :  { %v453_v41 = vpop.permute.xlu0 %452 }
 0x4f9   :  { %v455_v43 = vmul.f32 %v453_v41, %v432_v18 }
 0x4fb   :  { %457 = vrot.lane.b32.xlu2 %v455_v43, %s1843_s8 }
 0x500   :  { %v383_v44 = vpop.permute.xlu1 %382  ;;  %v472_v49 = vpop.permute.xlu0 %471 }
 0x501   :  { %v385_v46 = vmul.f32 %v383_v44, %v362_v28 }
 0x503   :  { %461 = vrot.lane.b32.xlu2 %v2098_v45, %s1841_s22  ;;  %387 = vrot.lane.b32.xlu1 %v385_v46, %s1843_s8 }
 0x555   :  { %v458_v47 = vpop.permute.xlu2 %457 }
 0x556   :  { %v460_v48 = vadd.f32 %v1711_v32, %v458_v47 }
 0x558   :  { %v474_v50 = vsub.f32 %v460_v48, %v472_v49 }
 0x55a   :  { %476 = vrot.lane.b32.xlu0 %v474_v50, %s1841_s22 }
 0x55d   :  { %v462_v53 = vpop.permute.xlu2 %461 }
 0x575   :  { %v388_v51 = vpop.permute.xlu1 %387 }
 0x576   :  { %v390_v52 = vadd.f32 %v1713_v36, %v388_v51 }
 0x578   :  { %v464_v54 = vsub.f32 %v390_v52, %v462_v53 }
 0x57a   :  { %466 = vrot.lane.b32.xlu1 %v464_v54, %s1841_s22 }
 0x5cc   :  { %v477_v56 = vpop.permute.xlu0 %476 }
 0x5cd   :  { %v479_v57 = vmul.f32 %v1633_v55, %v477_v56 }
 0x5cf   :  { %v2133_v58 = vadd.f32 %v479_v57, %v2086_v42 }
 0x5d1   :  { %484 = vst.msk [vmem:[#allocation5 + $0x18] sm:$0xf] %vm311_vm10, %v2133_v58  ;;  %1642 = vmatmul.msk.f32.vlgmr.msra.gmra.mxu3 %vm57_vm0, %v2133_v58 }
 0x5d2   :  { %1082 = vmatpush.msra.mxu3 %v1923_v1 }
 0x5d4   :  { %1083 = vmatpush.msra.mxu3 %v1932_v3 }
 0x5d6   :  { %1084 = vmatpush.msra.mxu3 %v1940_v5 }
 0x5d8   :  { %1085 = vmatpush.msra.mxu3 %v1954_v8 }
 0x5ec   :  { %v467_v42 = vpop.permute.xlu1 %466 }
 0x5ed   :  { %v469_v60 = vmul.f32 %v1632_v59, %v467_v42 }
 0x5ef   :  { %v2147_v61 = vadd.f32 %v469_v60, %v2098_v45 }
 0x5f1   :  { %482 = vst.msk [vmem:[#allocation4 + $0x4] sm:$0xf] %vm311_vm10, %v2147_v61  ;;  %1640 = vmatmul.msk.f32.vlgmr.msra.gmra.mxu2 %vm57_vm0, %v2147_v61 }
 0x5f2   :  { %1012 = vmatpush.msra.mxu2 %v1946_v6 }
 0x5f4   :  { %1013 = vmatpush.msra.mxu2 %v1960_v9 }
 0x5f6   :  { %1014 = vmatpush.msra.mxu2 %v1975_v12 }
 0x5f8   :  { %1015 = vmatpush.msra.mxu2 %v1989_v16 }
 0x654   :  { %v581_v45 = vpop.f32.mrf.mxu3 }
 0x655   :  { %v604_v0 = vadd.f32 %v581_v45, %v2058_v25  ;;  %v584_v10 = vadd.f32 %v581_v45, %v486_v7 }
 0x657   :  { %606 = vrot.lane.b32.xlu2 %v604_v0, %s1841_s22  ;;  %v1643_v11 = vmul.f32 -1.442695, %v584_v10 }
 0x659   :  { %1714 = vpow2.f32 %v1643_v11 }
 0x65f   :  { %v1715_v13 = vpop.eup %1714 }
 0x660   :  { %v588_v14 = vadd.f32 1.0, %v1715_v13 }
 0x662   :  { %1716 = vrcp.f32 %v588_v14  ;;  %v600_v21 = vand.u32 2147483648, %v588_v14  ;;  %vm594_vm6 = vweird.f32 %v588_v14  ;;  %v598_v22 = vand.u32 2147483647, %v588_v14 }
 0x664   :  { %v601_v26 = vor.u32 1.1754944e-38, %v600_v21  ;;  %vm599_vm8 = vcmp.eq.f32.partialorder %v598_v22, 8.507059e+37 }
 0x668   :  { %v1717_v15 = vpop.eup %1716 }
 0x669   :  { %v590_v17 = vmul.f32 %v1717_v15, %v588_v14  ;;  %vm595_vm5 = vweird.f32 %v1717_v15 }
 0x66a   :  { %vm596_vm7 = vmor %vm594_vm6, %vm595_vm5 }
 0x66b   :  { %v591_v18 = vsub.f32 1.0, %v590_v17 }
 0x66d   :  { %v592_v19 = vmul.f32 %v1717_v15, %v591_v18 }
 0x66f   :  { %v593_v20 = vadd.f32 %v1717_v15, %v592_v19 }
 0x671   :  { %v597_v24 = vsel %vm596_vm7, %v1717_v15, %v593_v20  ;;  %v1639_v15 = vld [vmem:[%s2470_s1 + $0x14] sm:$0xf]  ;;  %v1638_v20 = vld [vmem:[%s2470_s1 + $0x8] sm:$0xf] }
 0x672   :  { %v602_v27 = vsel %vm599_vm8, %v601_v26, %v597_v24 }
 0x674   :  { %v511_v2 = vpop.f32.mrf.mxu2 }
 0x675   :  { %v534_v4 = vadd.f32 %v511_v2, %v2069_v34  ;;  %v514_v31 = vadd.f32 %v511_v2, %v485_v30 }
 0x677   :  { %536 = vrot.lane.b32.xlu0 %v534_v4, %s1841_s22  ;;  %v1641_v32 = vmul.f32 -1.442695, %v514_v31 }
 0x679   :  { %1718 = vpow2.f32 %v1641_v32 }
 0x67f   :  { %v1719_v33 = vpop.eup %1718 }
 0x680   :  { %v518_v35 = vadd.f32 1.0, %v1719_v33 }
 0x682   :  { %1720 = vrcp.f32 %v518_v35  ;;  %v530_v41 = vand.u32 2147483648, %v518_v35  ;;  %vm524_vm11 = vweird.f32 %v518_v35  ;;  %v528_v43 = vand.u32 2147483647, %v518_v35 }
 0x684   :  { %v531_v46 = vor.u32 1.1754944e-38, %v530_v41  ;;  %vm529_vm13 = vcmp.eq.f32.partialorder %v528_v43, 8.507059e+37 }
 0x688   :  { %v1721_v36 = vpop.eup %1720 }
 0x689   :  { %v520_v37 = vmul.f32 %v1721_v36, %v518_v35  ;;  %vm525_vm9 = vweird.f32 %v1721_v36 }
 0x68a   :  { %vm526_vm12 = vmor %vm524_vm11, %vm525_vm9 }
 0x68b   :  { %v521_v38 = vsub.f32 1.0, %v520_v37 }
 0x68d   :  { %v522_v39 = vmul.f32 %v1721_v36, %v521_v38  ;;  %v655_v38 = vld [vmem:[#allocation2 + $0xc] sm:$0xf] }
 0x68f   :  { %v523_v40 = vadd.f32 %v1721_v36, %v522_v39 }
 0x691   :  { %v527_v44 = vsel %vm526_vm12, %v1721_v36, %v523_v40 }
 0x692   :  { %v532_v48 = vsel %vm529_vm13, %v531_v46, %v527_v44 }
 0x6b1   :  { %v607_v28 = vpop.permute.xlu2 %606 }
 0x6b2   :  { %v609_v29 = vmul.f32 %v607_v28, %v602_v27 }
 0x6b4   :  { %611 = vrot.lane.b32.xlu1 %v609_v29, %s1841_s22 }
 0x6e9   :  { %v537_v47 = vpop.permute.xlu0 %536 }
 0x6ea   :  { %v539_v49 = vmul.f32 %v537_v47, %v532_v48 }
 0x6ec   :  { %541 = vrot.lane.b32.xlu2 %v539_v49, %s1841_s22 }
 0x726   :  { %v612_v50 = vpop.permute.xlu1 %611 }
 0x727   :  { %v614_v51 = vadd.f32 %v612_v50, %v486_v7 }
 0x729   :  { %1722 = vtanh.f32 %v614_v51 }
 0x72f   :  { %v1723_v52 = vpop.eup %1722 }
 0x730   :  { %617 = vrot.lane.b32.xlu0 %v1723_v52, %s1841_s22 }
 0x746   :  { %v542_v53 = vpop.permute.xlu2 %541 }
 0x747   :  { %v544_v54 = vadd.f32 %v542_v53, %v485_v30 }
 0x749   :  { %1724 = vtanh.f32 %v544_v54 }
 0x74f   :  { %v1725_v55 = vpop.eup %1724 }
 0x750   :  { %547 = vrot.lane.b32.xlu1 %v1725_v55, %s1841_s22 }
 0x7a2   :  { %v618_v56 = vpop.permute.xlu0 %617 }
 0x7a3   :  { %v620_v57 = vsub.f32 %v2133_v58, %v618_v56 }
 0x7a5   :  { %622 = vrot.lane.b32.xlu2 %v620_v57, %s1843_s8 }
 0x7ad   :  { %641 = vrot.lane.b32.xlu2 %v2133_v58, %s1841_s22 }
 0x7c2   :  { %v548_v59 = vpop.permute.xlu1 %547 }
 0x7c3   :  { %v550_v42 = vsub.f32 %v2147_v61, %v548_v59 }
 0x7c5   :  { %552 = vrot.lane.b32.xlu0 %v550_v42, %s1843_s8 }
 0x7ff   :  { %v623_v60 = vpop.permute.xlu2 %622 }
 0x800   :  { %v625_v62 = vmul.f32 %v623_v60, %v602_v27 }
 0x802   :  { %627 = vrot.lane.b32.xlu1 %v625_v62, %s1843_s8 }
 0x807   :  { %v642_v4 = vpop.permute.xlu2 %641 }
 0x80a   :  { %631 = vrot.lane.b32.xlu1 %v2147_v61, %s1841_s22 }
 0x837   :  { %v553_v63 = vpop.permute.xlu0 %552 }
 0x838   :  { %v555_v45 = vmul.f32 %v553_v63, %v532_v48 }
 0x83a   :  { %557 = vrot.lane.b32.xlu0 %v555_v45, %s1843_s8 }
 0x874   :  { %v628_v0 = vpop.permute.xlu1 %627 }
 0x875   :  { %v630_v2 = vadd.f32 %v1723_v52, %v628_v0 }
 0x877   :  { %v644_v7 = vsub.f32 %v630_v2, %v642_v4 }
 0x879   :  { %646 = vrot.lane.b32.xlu2 %v644_v7, %s1841_s22 }
 0x87c   :  { %v632_v13 = vpop.permute.xlu1 %631 }
 0x8ac   :  { %v558_v10 = vpop.permute.xlu0 %557 }
 0x8ad   :  { %v560_v11 = vadd.f32 %v1725_v55, %v558_v10 }
 0x8af   :  { %v634_v14 = vsub.f32 %v560_v11, %v632_v13 }
 0x8b1   :  { %636 = vrot.lane.b32.xlu0 %v634_v14, %s1841_s22 }
 0x8d3   :  { %v647_v17 = vpop.permute.xlu2 %646 }
 0x8d4   :  { %v649_v18 = vmul.f32 %v1639_v15, %v647_v17 }
 0x8d6   :  { %v2183_v19 = vadd.f32 %v649_v18, %v2133_v58 }
 0x8d8   :  { %654 = vst.msk [vmem:[#allocation5 + $0x14] sm:$0xf] %vm311_vm10, %v2183_v19  ;;  %1648 = vmatmul.msk.f32.vlgmr.msrb.gmra.mxu3 %vm57_vm0, %v2183_v19 }
 0x8d9   :  { %1418 = vmatpush.msrb.mxu3 %v1923_v1 }
 0x8db   :  { %1419 = vmatpush.msrb.mxu3 %v1932_v3 }
 0x8dd   :  { %1420 = vmatpush.msrb.mxu3 %v1940_v5  ;;  %v656_v5 = vld [vmem:[#allocation3 + $0x10] sm:$0xf] }
 0x8df   :  { %1421 = vmatpush.msrb.mxu3 %v1954_v8 }
 0x923   :  { %v637_v58 = vpop.permute.xlu0 %636 }
 0x924   :  { %v639_v21 = vmul.f32 %v1638_v20, %v637_v58 }
 0x926   :  { %v2197_v22 = vadd.f32 %v639_v21, %v2147_v61 }
 0x928   :  { %652 = vst.msk [vmem:[#allocation4 + $0x8] sm:$0xf] %vm311_vm10, %v2197_v22  ;;  %1646 = vmatmul.msk.f32.vlgmr.msrb.gmra.mxu2 %vm57_vm0, %v2197_v22 }
 0x929   :  { %1348 = vmatpush.msrb.mxu2 %v1946_v6 }
 0x92b   :  { %1349 = vmatpush.msrb.mxu2 %v1960_v9 }
 0x92d   :  { %1350 = vmatpush.msrb.mxu2 %v1975_v12 }
 0x92f   :  { %1351 = vmatpush.msrb.mxu2 %v1989_v16 }
 0x95b   :  { %v751_v1 = vpop.f32.mrf.mxu3 }
 0x95c   :  { %v774_v3 = vadd.f32 %v751_v1, %v2058_v25  ;;  %v754_v8 = vadd.f32 %v751_v1, %v656_v5 }
 0x95e   :  { %776 = vrot.lane.b32.xlu1 %v774_v3, %s1841_s22  ;;  %v1649_v61 = vmul.f32 -1.442695, %v754_v8  ;;  %v93_v3 = vpop.f32.mrf.mxu0  ;;  %v1645_v8 = vld [vmem:[%s2470_s1 + $0x10] sm:$0xf] }
 0x960   :  { %1726 = vpow2.f32 %v1649_v61 }
 0x966   :  { %v1727_v27 = vpop.eup %1726 }
 0x967   :  { %v758_v6 = vadd.f32 1.0, %v1727_v27 }
 0x969   :  { %1728 = vrcp.f32 %v758_v6  ;;  %v770_v30 = vand.u32 2147483648, %v758_v6  ;;  %vm764_vm15 = vweird.f32 %v758_v6  ;;  %v768_v31 = vand.u32 2147483647, %v758_v6 }
 0x96b   :  { %v771_v33 = vor.u32 1.1754944e-38, %v770_v30  ;;  %vm769_vm3 = vcmp.eq.f32.partialorder %v768_v31, 8.507059e+37 }
 0x96f   :  { %v1729_v9 = vpop.eup %1728 }
 0x970   :  { %v760_v12 = vmul.f32 %v1729_v9, %v758_v6  ;;  %vm765_vm14 = vweird.f32 %v1729_v9 }
 0x971   :  { %vm766_vm2 = vmor %vm764_vm15, %vm765_vm14 }
 0x972   :  { %v761_v16 = vsub.f32 1.0, %v760_v12 }
 0x974   :  { %v762_v28 = vmul.f32 %v1729_v9, %v761_v16 }
 0x976   :  { %v763_v29 = vadd.f32 %v1729_v9, %v762_v28 }
 0x978   :  { %v767_v32 = vsel %vm766_vm2, %v1729_v9, %v763_v29  ;;  %v826_v29 = vld [vmem:[#allocation3 + $0xc] sm:$0xf] }
 0x979   :  { %v772_v36 = vsel %vm769_vm3, %v771_v33, %v767_v32 }
 0x9ab   :  { %v681_v24 = vpop.f32.mrf.mxu2 }
 0x9ac   :  { %v704_v26 = vadd.f32 %v681_v24, %v2069_v34  ;;  %v684_v39 = vadd.f32 %v681_v24, %v655_v38 }
 0x9ae   :  { %706 = vrot.lane.b32.xlu2 %v704_v26, %s1841_s22  ;;  %v1647_v40 = vmul.f32 -1.442695, %v684_v39 }
 0x9b0   :  { %1730 = vpow2.f32 %v1647_v40 }
 0x9b6   :  { %v1731_v41 = vpop.eup %1730 }
 0x9b7   :  { %v688_v43 = vadd.f32 1.0, %v1731_v41 }
 0x9b9   :  { %1732 = vrcp.f32 %v688_v43  ;;  %v700_v50 = vand.u32 2147483648, %v688_v43  ;;  %vm694_vm5 = vweird.f32 %v688_v43  ;;  %v698_v51 = vand.u32 2147483647, %v688_v43 }
 0x9bb   :  { %v701_v53 = vor.u32 1.1754944e-38, %v700_v50  ;;  %vm699_vm7 = vcmp.eq.f32.partialorder %v698_v51, 8.507059e+37 }
 0x9bf   :  { %v1733_v44 = vpop.eup %1732 }
 0x9c0   :  { %v690_v46 = vmul.f32 %v1733_v44, %v688_v43  ;;  %vm695_vm4 = vweird.f32 %v1733_v44 }
 0x9c1   :  { %vm696_vm6 = vmor %vm694_vm5, %vm695_vm4 }
 0x9c2   :  { %v691_v47 = vsub.f32 1.0, %v690_v46 }
 0x9c4   :  { %v692_v48 = vmul.f32 %v1733_v44, %v691_v47 }
 0x9c6   :  { %v693_v49 = vadd.f32 %v1733_v44, %v692_v48 }
 0x9c8   :  { %v697_v52 = vsel %vm696_vm6, %v1733_v44, %v693_v49 }
 0x9c9   :  { %v702_v54 = vsel %vm699_vm7, %v701_v53, %v697_v52 }
 0x9d0   :  { %v777_v35 = vpop.permute.xlu1 %776 }
 0x9d1   :  { %v779_v37 = vmul.f32 %v777_v35, %v772_v36 }
 0x9d3   :  { %781 = vrot.lane.b32.xlu0 %v779_v37, %s1841_s22 }
 0xa08   :  { %v707_v55 = vpop.permute.xlu2 %706 }
 0xa09   :  { %v709_v56 = vmul.f32 %v707_v55, %v702_v54 }
 0xa0b   :  { %711 = vrot.lane.b32.xlu1 %v709_v56, %s1841_s22 }
 0xa45   :  { %v782_v57 = vpop.permute.xlu0 %781 }
 0xa46   :  { %v784_v59 = vadd.f32 %v782_v57, %v656_v5  ;;  %v94_v5 = vadd.f32 %v2056_v23, %v93_v3  ;;  %v1644_v23 = vld [vmem:[%s2470_s1 + $0xc] sm:$0xf] }
 0xa48   :  { %1734 = vtanh.f32 %v784_v59  ;;  %102 = vst.msk [vmem:[#allocation2 + $0x10] sm:$0xff] %vm99_vm1, %v94_v5 }
 0xa4e   :  { %v1735_v42 = vpop.eup %1734 }
 0xa4f   :  { %787 = vrot.lane.b32.xlu2 %v1735_v42, %s1841_s22  ;;  %v825_v31 = vld [vmem:[#allocation2 + $0x10] sm:$0xf] }
 0xa7d   :  { %v712_v60 = vpop.permute.xlu1 %711 }
 0xa7e   :  { %v714_v62 = vadd.f32 %v712_v60, %v655_v38 }
 0xa80   :  { %1736 = vtanh.f32 %v714_v62 }
 0xa86   :  { %v1737_v63 = vpop.eup %1736 }
 0xa87   :  { %717 = vrot.lane.b32.xlu0 %v1737_v63, %s1841_s22 }
 0xaa9   :  { %v788_v45 = vpop.permute.xlu2 %787 }
 0xaaa   :  { %v790_v0 = vsub.f32 %v2183_v19, %v788_v45 }
 0xaac   :  { %792 = vrot.lane.b32.xlu1 %v790_v0, %s1843_s8 }
 0xab4   :  { %811 = vrot.lane.b32.xlu1 %v2183_v19, %s1841_s22 }
 0xaf9   :  { %v718_v2 = vpop.permute.xlu0 %717 }
 0xafa   :  { %v720_v4 = vsub.f32 %v2197_v22, %v718_v2 }
 0xafc   :  { %722 = vrot.lane.b32.xlu2 %v720_v4, %s1843_s8 }
 0xb1e   :  { %v793_v7 = vpop.permute.xlu1 %792 }
 0xb1f   :  { %v795_v10 = vmul.f32 %v793_v7, %v772_v36 }
 0xb21   :  { %797 = vrot.lane.b32.xlu0 %v795_v10, %s1843_s8 }
 0xb26   :  { %v812_v17 = vpop.permute.xlu1 %811 }
 0xb29   :  { %801 = vrot.lane.b32.xlu0 %v2197_v22, %s1841_s22 }
 0xb56   :  { %v723_v11 = vpop.permute.xlu2 %722 }
 0xb57   :  { %v725_v13 = vmul.f32 %v723_v11, %v702_v54 }
 0xb59   :  { %727 = vrot.lane.b32.xlu2 %v725_v13, %s1843_s8 }
 0xb93   :  { %v798_v14 = vpop.permute.xlu0 %797 }
 0xb94   :  { %v800_v15 = vadd.f32 %v1735_v42, %v798_v14 }
 0xb96   :  { %v814_v18 = vsub.f32 %v800_v15, %v812_v17 }
 0xb98   :  { %816 = vrot.lane.b32.xlu1 %v814_v18, %s1841_s22 }
 0xb9b   :  { %v802_v21 = vpop.permute.xlu0 %801 }
 0xbb3   :  { %v728_v20 = vpop.permute.xlu2 %727 }
 0xbb4   :  { %v730_v58 = vadd.f32 %v1737_v63, %v728_v20 }
 0xbb6   :  { %v804_v1 = vsub.f32 %v730_v58, %v802_v21 }
 0xbb8   :  { %806 = vrot.lane.b32.xlu2 %v804_v1, %s1841_s22 }
 0xc0a   :  { %v817_v61 = vpop.permute.xlu1 %816 }
 0xc0b   :  { %v819_v24 = vmul.f32 %v1645_v8, %v817_v61 }
 0xc0d   :  { %v2233_v26 = vadd.f32 %v819_v24, %v2183_v19 }
 0xc0f   :  { %824 = vst.msk [vmem:[#allocation5 + $0x10] sm:$0xf] %vm311_vm10, %v2233_v26  ;;  %1654 = vmatmul.msk.f32.vlgmr.msra.gmra.mxu1 %vm57_vm0, %v2233_v26 }
 0xc12   :  { %v807_v27 = vpop.permute.xlu2 %806 }
 0xc13   :  { %v809_v6 = vmul.f32 %v1644_v23, %v807_v27 }
 0xc15   :  { %v2243_v9 = vadd.f32 %v809_v6, %v2197_v22 }
 0xc17   :  { %822 = vst.msk [vmem:[#allocation4 + $0xc] sm:$0xf] %vm311_vm10, %v2243_v9  ;;  %1652 = vmatmul.msk.f32.vlgmr.msrb.gmra.mxu0 %vm57_vm0, %v2243_v9 }
 0xc8c   :  { %v919_v19 = vpop.f32.mrf.mxu1 }
 0xc8d   :  { %v942_v12 = vadd.f32 %v919_v19, %v2058_v25  ;;  %v922_v30 = vadd.f32 %v919_v19, %v826_v29  ;;  %v1651_v19 = vld [vmem:[%s2470_s1 + $0xc] sm:$0xf] }
 0xc8f   :  { %944 = vrot.lane.b32.xlu0 %v942_v12, %s1841_s22  ;;  %v1655_v22 = vmul.f32 -1.442695, %v922_v30  ;;  %v1507_v30 = vld [vmem:[#allocation4 + $0xc] sm:$0xf] }
 0xc91   :  { %1738 = vpow2.f32 %v1655_v22 }
 0xc94   :  { %v849_v16 = vpop.f32.mrf.mxu0 }
 0xc95   :  { %v872_v28 = vadd.f32 %v849_v16, %v2069_v34  ;;  %v852_v32 = vadd.f32 %v849_v16, %v825_v31 }
 0xc97   :  { %874 = vrot.lane.b32.xlu1 %v872_v28, %s1841_s22  ;;  %v1653_v33 = vmul.f32 -1.442695, %v852_v32  ;;  %v1739_v35 = vpop.eup %1738 }
 0xc98   :  { %v926_v36 = vadd.f32 1.0, %v1739_v35 }
 0xc99   :  { %1740 = vpow2.f32 %v1653_v33 }
 0xc9a   :  { %1742 = vrcp.f32 %v926_v36  ;;  %v938_v49 = vand.u32 2147483648, %v926_v36  ;;  %vm932_vm8 = vweird.f32 %v926_v36  ;;  %v936_v50 = vand.u32 2147483647, %v926_v36 }
 0xc9c   :  { %v939_v53 = vor.u32 1.1754944e-38, %v938_v49  ;;  %vm937_vm11 = vcmp.eq.f32.partialorder %v936_v50, 8.507059e+37 }
 0xc9f   :  { %v1741_v37 = vpop.eup %1740 }
 0xca0   :  { %v856_v38 = vadd.f32 1.0, %v1741_v37  ;;  %v1743_v39 = vpop.eup %1742  ;;  %v1500_v37 = vld [vmem:[%s2470_s1 + $0x10] sm:$0xf] }
 0xca1   :  { %v928_v40 = vmul.f32 %v1743_v39, %v926_v36  ;;  %vm933_vm1 = vweird.f32 %v1743_v39 }
 0xca2   :  { %1744 = vrcp.f32 %v856_v38  ;;  %vm934_vm9 = vmor %vm932_vm8, %vm933_vm1  ;;  %v868_v59 = vand.u32 2147483648, %v856_v38  ;;  %vm862_vm13 = vweird.f32 %v856_v38  ;;  %v866_v42 = vand.u32 2147483647, %v856_v38 }
 0xca3   :  { %v929_v41 = vsub.f32 1.0, %v928_v40 }
 0xca4   :  { %v869_v62 = vor.u32 1.1754944e-38, %v868_v59  ;;  %vm867_vm15 = vcmp.eq.f32.partialorder %v866_v42, 8.507059e+37 }
 0xca5   :  { %v930_v44 = vmul.f32 %v1743_v39, %v929_v41 }
 0xca7   :  { %v931_v47 = vadd.f32 %v1743_v39, %v930_v44 }
 0xca8   :  { %v1745_v43 = vpop.eup %1744 }
 0xca9   :  { %v858_v46 = vmul.f32 %v1745_v43, %v856_v38  ;;  %v935_v51 = vsel %vm934_vm9, %v1743_v39, %v931_v47  ;;  %vm863_vm12 = vweird.f32 %v1745_v43  ;;  %v1516_v39 = vld [vmem:[#allocation5 + $0x10] sm:$0xf]  ;;  %v994_v47 = vld [vmem:[#allocation3 + $0x8] sm:$0xf] }
 0xcaa   :  { %v940_v55 = vsel %vm937_vm11, %v939_v53, %v935_v51  ;;  %vm864_vm14 = vmor %vm862_vm13, %vm863_vm12 }
 0xcab   :  { %v859_v48 = vsub.f32 1.0, %v858_v46 }
 0xcad   :  { %v860_v52 = vmul.f32 %v1745_v43, %v859_v48 }
 0xcaf   :  { %v861_v57 = vadd.f32 %v1745_v43, %v860_v52 }
 0xcb1   :  { %v865_v60 = vsel %vm864_vm14, %v1745_v43, %v861_v57 }
 0xcb2   :  { %v870_v45 = vsel %vm867_vm15, %v869_v62, %v865_v60 }
 0xd01   :  { %v945_v54 = vpop.permute.xlu0 %944 }
 0xd02   :  { %v947_v56 = vmul.f32 %v945_v54, %v940_v55 }
 0xd04   :  { %949 = vrot.lane.b32.xlu2 %v947_v56, %s1841_s22 }
 0xd09   :  { %v875_v63 = vpop.permute.xlu1 %874 }
 0xd0a   :  { %v877_v0 = vmul.f32 %v875_v63, %v870_v45 }
 0xd0c   :  { %879 = vrot.lane.b32.xlu0 %v877_v0, %s1841_s22  ;;  %v993_v0 = vld [vmem:[#allocation2 + $0x14] sm:$0xf] }
 0xd5e   :  { %v950_v2 = vpop.permute.xlu2 %949 }
 0xd5f   :  { %v952_v4 = vadd.f32 %v950_v2, %v826_v29  ;;  %v1499_v29 = vld [vmem:[%s2470_s1 + $0xc] sm:$0xf] }
 0xd61   :  { %1746 = vtanh.f32 %v952_v4 }
 0xd67   :  { %v1747_v7 = vpop.eup %1746 }
 0xd68   :  { %955 = vrot.lane.b32.xlu1 %v1747_v7, %s1841_s22 }
 0xd7e   :  { %v880_v10 = vpop.permute.xlu0 %879 }
 0xd7f   :  { %v882_v11 = vadd.f32 %v880_v10, %v825_v31 }
 0xd81   :  { %1748 = vtanh.f32 %v882_v11 }
 0xd87   :  { %v1749_v13 = vpop.eup %1748 }
 0xd88   :  { %885 = vrot.lane.b32.xlu2 %v1749_v13, %s1841_s22 }
 0xdda   :  { %v956_v14 = vpop.permute.xlu1 %955 }
 0xddb   :  { %v958_v15 = vsub.f32 %v2233_v26, %v956_v14 }
 0xddd   :  { %960 = vrot.lane.b32.xlu0 %v958_v15, %s1843_s8 }
 0xde2   :  { %v886_v17 = vpop.permute.xlu2 %885 }
 0xde3   :  { %v888_v18 = vsub.f32 %v2243_v9, %v886_v17 }
 0xde5   :  { %979 = vrot.lane.b32.xlu0 %v2233_v26, %s1841_s22  ;;  %890 = vrot.lane.b32.xlu1 %v888_v18, %s1843_s8 }
 0xe4f   :  { %v961_v20 = vpop.permute.xlu0 %960 }
 0xe50   :  { %v963_v58 = vmul.f32 %v961_v20, %v940_v55 }
 0xe52   :  { %965 = vrot.lane.b32.xlu2 %v963_v58, %s1843_s8 }
 0xe57   :  { %v891_v21 = vpop.permute.xlu1 %890  ;;  %v980_v8 = vpop.permute.xlu0 %979 }
 0xe58   :  { %v893_v1 = vmul.f32 %v891_v21, %v870_v45 }
 0xe5a   :  { %969 = vrot.lane.b32.xlu2 %v2243_v9, %s1841_s22  ;;  %895 = vrot.lane.b32.xlu1 %v893_v1, %s1843_s8 }
 0xeac   :  { %v966_v3 = vpop.permute.xlu2 %965 }
 0xead   :  { %v968_v5 = vadd.f32 %v1747_v7, %v966_v3 }
 0xeaf   :  { %v982_v61 = vsub.f32 %v968_v5, %v980_v8 }
 0xeb1   :  { %984 = vrot.lane.b32.xlu0 %v982_v61, %s1841_s22 }
 0xeb4   :  { %v970_v27 = vpop.permute.xlu2 %969 }
 0xecc   :  { %v896_v24 = vpop.permute.xlu1 %895 }
 0xecd   :  { %v898_v23 = vadd.f32 %v1749_v13, %v896_v24 }
 0xecf   :  { %v972_v6 = vsub.f32 %v898_v23, %v970_v27 }
 0xed1   :  { %974 = vrot.lane.b32.xlu1 %v972_v6, %s1841_s22 }
 0xf23   :  { %v985_v12 = vpop.permute.xlu0 %984 }
 0xf24   :  { %v987_v16 = vmul.f32 %v1651_v19, %v985_v12 }
 0xf26   :  { %v2273_v28 = vadd.f32 %v987_v16, %v2233_v26  ;;  %v1650_v26 = vld [vmem:[%s2470_s1 + $0x10] sm:$0xf] }
 0xf28   :  { %992 = vst.msk [vmem:[#allocation5 + $0xc] sm:$0xf] %vm311_vm10, %v2273_v28  ;;  %1660 = vmatmul.msk.f32.vlgmr.msra.gmra.mxu3 %vm57_vm0, %v2273_v28 }
 0xf2f   :  { %v1515_v22 = vld [vmem:[#allocation5 + $0xc] sm:$0xf] }
 0xf30   :  { %v1523_v31 = vadd.f32 %v1515_v22, %v1507_v30 }
 0xf32   :  { %v1531_v32 = vmul.f32 %v1523_v31, %v1499_v29 }
 0xf34   :  { %1539 = vst.msk [vmem:[#allocation6 + $0xc] sm:$0xf] %vm311_vm10, %v1531_v32 }
 0xf43   :  { %v975_v33 = vpop.permute.xlu1 %974 }
 0xf44   :  { %v977_v35 = vmul.f32 %v1650_v26, %v975_v33 }
 0xf46   :  { %v2287_v36 = vadd.f32 %v977_v35, %v2243_v9 }
 0xf48   :  { %990 = vst.msk [vmem:[#allocation4 + $0x10] sm:$0xf] %vm311_vm10, %v2287_v36  ;;  %1658 = vmatmul.msk.f32.vlgmr.msra.gmra.mxu2 %vm57_vm0, %v2287_v36 }
 0xf4f   :  { %v1508_v38 = vld [vmem:[#allocation4 + $0x10] sm:$0xf] }
 0xf50   :  { %v1524_v40 = vadd.f32 %v1516_v39, %v1508_v38 }
 0xf52   :  { %v1532_v41 = vmul.f32 %v1524_v40, %v1500_v37 }
 0xf54   :  { %1540 = vst.msk [vmem:[#allocation6 + $0x10] sm:$0xf] %vm311_vm10, %v1532_v41 }
 0xfab   :  { %v1087_v43 = vpop.f32.mrf.mxu3 }
 0xfac   :  { %v1110_v9 = vadd.f32 %v1087_v43, %v2058_v25  ;;  %v1090_v48 = vadd.f32 %v1087_v43, %v994_v47  ;;  %v1657_v43 = vld [vmem:[%s2470_s1 + $0x8] sm:$0xf] }
 0xfae   :  { %1112 = vrot.lane.b32.xlu2 %v1110_v9, %s1841_s22  ;;  %v1661_v49 = vmul.f32 -1.442695, %v1090_v48  ;;  %v1506_v48 = vld [vmem:[#allocation4 + $0x8] sm:$0xf] }
 0xfb0   :  { %1750 = vpow2.f32 %v1661_v49 }
 0xfb6   :  { %v1751_v50 = vpop.eup %1750 }
 0xfb7   :  { %v1094_v51 = vadd.f32 1.0, %v1751_v50 }
 0xfb9   :  { %1752 = vrcp.f32 %v1094_v51  ;;  %v1106_v57 = vand.u32 2147483648, %v1094_v51  ;;  %vm1100_vm3 = vweird.f32 %v1094_v51  ;;  %v1104_v59 = vand.u32 2147483647, %v1094_v51 }
 0xfbb   :  { %v1107_v60 = vor.u32 1.1754944e-38, %v1106_v57  ;;  %vm1105_vm5 = vcmp.eq.f32.partialorder %v1104_v59, 8.507059e+37  ;;  %v1517_v57 = vld [vmem:[#allocation5 + $0x14] sm:$0xf] }
 0xfbf   :  { %v1753_v52 = vpop.eup %1752 }
 0xfc0   :  { %v1096_v53 = vmul.f32 %v1753_v52, %v1094_v51  ;;  %vm1101_vm2 = vweird.f32 %v1753_v52 }
 0xfc1   :  { %vm1102_vm4 = vmor %vm1100_vm3, %vm1101_vm2 }
 0xfc2   :  { %v1097_v54 = vsub.f32 1.0, %v1096_v53 }
 0xfc4   :  { %v1098_v55 = vmul.f32 %v1753_v52, %v1097_v54 }
 0xfc6   :  { %v1099_v56 = vadd.f32 %v1753_v52, %v1098_v55  ;;  %v1501_v55 = vld [vmem:[%s2470_s1 + $0x14] sm:$0xf] }
 0xfc8   :  { %v1103_v42 = vsel %vm1102_vm4, %v1753_v52, %v1099_v56 }
 0xfc9   :  { %v1108_v62 = vsel %vm1105_vm5, %v1107_v60, %v1103_v42 }
 0xfcb   :  { %v1017_v44 = vpop.f32.mrf.mxu2 }
 0xfcc   :  { %v1040_v46 = vadd.f32 %v1017_v44, %v2069_v34  ;;  %v1020_v2 = vadd.f32 %v1017_v44, %v993_v0 }
 0xfce   :  { %1042 = vrot.lane.b32.xlu0 %v1040_v46, %s1841_s22  ;;  %v1659_v4 = vmul.f32 -1.442695, %v1020_v2 }
 0xfd0   :  { %1754 = vpow2.f32 %v1659_v4 }
 0xfd6   :  { %v1755_v7 = vpop.eup %1754 }
 0xfd7   :  { %v1024_v10 = vadd.f32 1.0, %v1755_v7 }
 0xfd9   :  { %1756 = vrcp.f32 %v1024_v10  ;;  %v1036_v18 = vand.u32 2147483648, %v1024_v10  ;;  %vm1030_vm7 = vweird.f32 %v1024_v10  ;;  %v1034_v20 = vand.u32 2147483647, %v1024_v10 }
 0xfdb   :  { %v1037_v21 = vor.u32 1.1754944e-38, %v1036_v18  ;;  %vm1035_vm8 = vcmp.eq.f32.partialorder %v1034_v20, 8.507059e+37 }
 0xfdf   :  { %v1757_v11 = vpop.eup %1756 }
 0xfe0   :  { %v1026_v13 = vmul.f32 %v1757_v11, %v1024_v10  ;;  %vm1031_vm6 = vweird.f32 %v1757_v11 }
 0xfe1   :  { %vm1032_vm1 = vmor %vm1030_vm7, %vm1031_vm6 }
 0xfe2   :  { %v1027_v14 = vsub.f32 1.0, %v1026_v13 }
 0xfe4   :  { %v1028_v15 = vmul.f32 %v1757_v11, %v1027_v14 }
 0xfe6   :  { %v1029_v17 = vadd.f32 %v1757_v11, %v1028_v15 }
 0xfe8   :  { %v1033_v58 = vsel %vm1032_vm1, %v1757_v11, %v1029_v17 }
 0xfe9   :  { %v1038_v3 = vsel %vm1035_vm8, %v1037_v21, %v1033_v58 }
0x1008   :  { %v1113_v63 = vpop.permute.xlu2 %1112 }
0x1009   :  { %v1115_v45 = vmul.f32 %v1113_v63, %v1108_v62 }
0x100b   :  { %1117 = vrot.lane.b32.xlu1 %v1115_v45, %s1841_s22 }
0x1040   :  { %v1043_v1 = vpop.permute.xlu0 %1042 }
0x1041   :  { %v1045_v5 = vmul.f32 %v1043_v1, %v1038_v3 }
0x1043   :  { %1047 = vrot.lane.b32.xlu2 %v1045_v5, %s1841_s22  ;;  %v1161_v5 = vld [vmem:[#allocation2 + $0x18] sm:$0xf] }
0x107d   :  { %v1118_v8 = vpop.permute.xlu1 %1117 }
0x107e   :  { %v1120_v61 = vadd.f32 %v1118_v8, %v994_v47  ;;  %v1498_v47 = vld [vmem:[%s2470_s1 + $0x8] sm:$0xf] }
0x1080   :  { %1758 = vtanh.f32 %v1120_v61 }
0x1086   :  { %v1759_v24 = vpop.eup %1758 }
0x1087   :  { %1123 = vrot.lane.b32.xlu0 %v1759_v24, %s1841_s22 }
0x109d   :  { %v1048_v23 = vpop.permute.xlu2 %1047 }
0x109e   :  { %v1050_v27 = vadd.f32 %v1048_v23, %v993_v0 }
0x10a0   :  { %1760 = vtanh.f32 %v1050_v27 }
0x10a6   :  { %v1761_v6 = vpop.eup %1760 }
0x10a7   :  { %1053 = vrot.lane.b32.xlu1 %v1761_v6, %s1841_s22 }
0x10f9   :  { %v1124_v19 = vpop.permute.xlu0 %1123 }
0x10fa   :  { %v1126_v12 = vsub.f32 %v2273_v28, %v1124_v19 }
0x10fc   :  { %1128 = vrot.lane.b32.xlu2 %v1126_v12, %s1843_s8 }
0x1104   :  { %1147 = vrot.lane.b32.xlu2 %v2273_v28, %s1841_s22 }
0x1119   :  { %v1054_v16 = vpop.permute.xlu1 %1053 }
0x111a   :  { %v1056_v29 = vsub.f32 %v2287_v36, %v1054_v16 }
0x111c   :  { %1058 = vrot.lane.b32.xlu0 %v1056_v29, %s1843_s8 }
0x1156   :  { %v1129_v30 = vpop.permute.xlu2 %1128 }
0x1157   :  { %v1131_v22 = vmul.f32 %v1129_v30, %v1108_v62  ;;  %v1162_v62 = vld [vmem:[#allocation3 + $0x4] sm:$0xf] }
0x1159   :  { %1133 = vrot.lane.b32.xlu1 %v1131_v22, %s1843_s8 }
0x115e   :  { %v1148_v35 = vpop.permute.xlu2 %1147 }
0x1161   :  { %1137 = vrot.lane.b32.xlu1 %v2287_v36, %s1841_s22 }
0x118e   :  { %v1059_v31 = vpop.permute.xlu0 %1058 }
0x118f   :  { %v1061_v32 = vmul.f32 %v1059_v31, %v1038_v3 }
0x1191   :  { %1063 = vrot.lane.b32.xlu0 %v1061_v32, %s1843_s8 }
0x11cb   :  { %v1134_v26 = vpop.permute.xlu1 %1133 }
0x11cc   :  { %v1136_v33 = vadd.f32 %v1759_v24, %v1134_v26 }
0x11ce   :  { %v1150_v37 = vsub.f32 %v1136_v33, %v1148_v35 }
0x11d0   :  { %1152 = vrot.lane.b32.xlu2 %v1150_v37, %s1841_s22 }
0x11d3   :  { %v1138_v40 = vpop.permute.xlu1 %1137 }
0x1203   :  { %v1064_v38 = vpop.permute.xlu0 %1063 }
0x1204   :  { %v1066_v39 = vadd.f32 %v1761_v6, %v1064_v38 }
0x1206   :  { %v1140_v41 = vsub.f32 %v1066_v39, %v1138_v40 }
0x1208   :  { %1142 = vrot.lane.b32.xlu0 %v1140_v41, %s1841_s22 }
0x122a   :  { %v1153_v9 = vpop.permute.xlu2 %1152 }
0x122b   :  { %v1155_v44 = vmul.f32 %v1657_v43, %v1153_v9 }
0x122d   :  { %v2321_v46 = vadd.f32 %v1155_v44, %v2273_v28  ;;  %v1656_v28 = vld [vmem:[%s2470_s1 + $0x14] sm:$0xf] }
0x122f   :  { %1160 = vst.msk [vmem:[#allocation5 + $0x8] sm:$0xf] %vm311_vm10, %v2321_v46  ;;  %1666 = vmatmul.msk.f32.vlgmr.msrb.gmra.mxu1 %vm57_vm0, %v2321_v46 }
0x1236   :  { %v1514_v49 = vld [vmem:[#allocation5 + $0x8] sm:$0xf] }
0x1237   :  { %v1522_v50 = vadd.f32 %v1514_v49, %v1506_v48 }
0x1239   :  { %v1530_v51 = vmul.f32 %v1522_v50, %v1498_v47 }
0x123b   :  { %1538 = vst.msk [vmem:[#allocation6 + $0x8] sm:$0xf] %vm311_vm10, %v1530_v51 }
0x127a   :  { %v1143_v52 = vpop.permute.xlu0 %1142 }
0x127b   :  { %v1145_v53 = vmul.f32 %v1656_v28, %v1143_v52 }
0x127d   :  { %v2335_v54 = vadd.f32 %v1145_v53, %v2287_v36 }
0x127f   :  { %1158 = vst.msk [vmem:[#allocation4 + $0x14] sm:$0xf] %vm311_vm10, %v2335_v54  ;;  %1664 = vmatmul.msk.f32.vlgmr.msra.gmra.mxu0 %vm57_vm0, %v2335_v54 }
0x1286   :  { %v1509_v56 = vld [vmem:[#allocation4 + $0x14] sm:$0xf] }
0x1287   :  { %v1525_v59 = vadd.f32 %v1517_v57, %v1509_v56 }
0x1289   :  { %v1533_v42 = vmul.f32 %v1525_v59, %v1501_v55 }
0x128b   :  { %1541 = vst.msk [vmem:[#allocation6 + $0x14] sm:$0xf] %vm311_vm10, %v1533_v42 }
0x12ac   :  { %v1255_v60 = vpop.f32.mrf.mxu1 }
0x12ad   :  { %v1278_v36 = vadd.f32 %v1255_v60, %v2058_v25  ;;  %v1258_v63 = vadd.f32 %v1255_v60, %v1162_v62  ;;  %v1663_v60 = vld [vmem:[%s2470_s1 + $0x4] sm:$0xf] }
0x12af   :  { %1280 = vrot.lane.b32.xlu1 %v1278_v36, %s1841_s22  ;;  %v1667_v45 = vmul.f32 -1.442695, %v1258_v63 }
0x12b1   :  { %1762 = vpow2.f32 %v1667_v45  ;;  %v1662_v45 = vld [vmem:[%s2470_s1 + $0x18] sm:$0xf] }
0x12b7   :  { %v1763_v4 = vpop.eup %1762 }
0x12b8   :  { %v1262_v7 = vadd.f32 1.0, %v1763_v4 }
0x12ba   :  { %1764 = vrcp.f32 %v1262_v7  ;;  %v1274_v17 = vand.u32 2147483648, %v1262_v7  ;;  %vm1268_vm11 = vweird.f32 %v1262_v7  ;;  %v1272_v18 = vand.u32 2147483647, %v1262_v7 }
0x12bc   :  { %v1275_v58 = vor.u32 1.1754944e-38, %v1274_v17  ;;  %vm1273_vm13 = vcmp.eq.f32.partialorder %v1272_v18, 8.507059e+37 }
0x12c0   :  { %v1765_v10 = vpop.eup %1764 }
0x12c1   :  { %v1264_v11 = vmul.f32 %v1765_v10, %v1262_v7  ;;  %vm1269_vm9 = vweird.f32 %v1765_v10  ;;  %v1505_v7 = vld [vmem:[#allocation4 + $0x4] sm:$0xf] }
0x12c2   :  { %vm1270_vm12 = vmor %vm1268_vm11, %vm1269_vm9 }
0x12c3   :  { %v1265_v13 = vsub.f32 1.0, %v1264_v11 }
0x12c5   :  { %v1266_v14 = vmul.f32 %v1765_v10, %v1265_v13 }
0x12c7   :  { %v1267_v15 = vadd.f32 %v1765_v10, %v1266_v14 }
0x12c9   :  { %v1271_v20 = vsel %vm1270_vm12, %v1765_v10, %v1267_v15  ;;  %v1518_v15 = vld [vmem:[#allocation5 + $0x18] sm:$0xf]  ;;  %vm1561_vm12 = vcmask 523264  }
0x12ca   :  { %v1276_v1 = vsel %vm1273_vm13, %v1275_v58, %v1271_v20 }
0x12fc   :  { %v1185_v0 = vpop.f32.mrf.mxu0 }
0x12fd   :  { %v1208_v2 = vadd.f32 %v1185_v0, %v2069_v34  ;;  %v1188_v8 = vadd.f32 %v1185_v0, %v1161_v5 }
0x12ff   :  { %1210 = vrot.lane.b32.xlu2 %v1208_v2, %s1841_s22  ;;  %v1665_v61 = vmul.f32 -1.442695, %v1188_v8 }
0x1301   :  { %1766 = vpow2.f32 %v1665_v61  ;;  %v1329_v61 = vld [vmem:[#allocation2 + $0x1c] sm:$0xf] }
0x1307   :  { %v1767_v24 = vpop.eup %1766 }
0x1308   :  { %v1192_v23 = vadd.f32 1.0, %v1767_v24 }
0x130a   :  { %1768 = vrcp.f32 %v1192_v23  ;;  %v1204_v29 = vand.u32 2147483648, %v1192_v23  ;;  %vm1198_vm15 = vweird.f32 %v1192_v23  ;;  %v1202_v30 = vand.u32 2147483647, %v1192_v23 }
0x130c   :  { %v1205_v31 = vor.u32 1.1754944e-38, %v1204_v29  ;;  %vm1203_vm3 = vcmp.eq.f32.partialorder %v1202_v30, 8.507059e+37 }
0x1310   :  { %v1769_v27 = vpop.eup %1768 }
0x1311   :  { %v1194_v6 = vmul.f32 %v1769_v27, %v1192_v23  ;;  %vm1199_vm14 = vweird.f32 %v1769_v27 }
0x1312   :  { %vm1200_vm2 = vmor %vm1198_vm15, %vm1199_vm14 }
0x1313   :  { %v1195_v19 = vsub.f32 1.0, %v1194_v6 }
0x1315   :  { %v1196_v12 = vmul.f32 %v1769_v27, %v1195_v19 }
0x1317   :  { %v1197_v16 = vadd.f32 %v1769_v27, %v1196_v12 }
0x1319   :  { %v1201_v22 = vsel %vm1200_vm2, %v1769_v27, %v1197_v16 }
0x131a   :  { %v1206_v32 = vsel %vm1203_vm3, %v1205_v31, %v1201_v22 }
0x1321   :  { %v1281_v21 = vpop.permute.xlu1 %1280 }
0x1322   :  { %v1283_v3 = vmul.f32 %v1281_v21, %v1276_v1 }
0x1324   :  { %1285 = vrot.lane.b32.xlu0 %v1283_v3, %s1841_s22  ;;  %v1330_v3 = vld [vmem:[#allocation3] sm:$0xf] }
0x1359   :  { %v1211_v26 = vpop.permute.xlu2 %1210 }
0x135a   :  { %v1213_v33 = vmul.f32 %v1211_v26, %v1206_v32 }
0x135c   :  { %1215 = vrot.lane.b32.xlu1 %v1213_v33, %s1841_s22 }
0x1396   :  { %v1286_v35 = vpop.permute.xlu0 %1285 }
0x1397   :  { %v1288_v37 = vadd.f32 %v1286_v35, %v1162_v62 }
0x1399   :  { %1770 = vtanh.f32 %v1288_v37 }
0x139f   :  { %v1771_v38 = vpop.eup %1770 }
0x13a0   :  { %1291 = vrot.lane.b32.xlu2 %v1771_v38, %s1841_s22 }
0x13ce   :  { %v1216_v39 = vpop.permute.xlu1 %1215 }
0x13cf   :  { %v1218_v40 = vadd.f32 %v1216_v39, %v1161_v5 }
0x13d1   :  { %1772 = vtanh.f32 %v1218_v40 }
0x13d7   :  { %v1773_v41 = vpop.eup %1772 }
0x13d8   :  { %1221 = vrot.lane.b32.xlu0 %v1773_v41, %s1841_s22 }
0x13fa   :  { %v1292_v43 = vpop.permute.xlu2 %1291 }
0x13fb   :  { %v1294_v9 = vsub.f32 %v2321_v46, %v1292_v43 }
0x13fd   :  { %1296 = vrot.lane.b32.xlu1 %v1294_v9, %s1843_s8 }
0x1405   :  { %1315 = vrot.lane.b32.xlu1 %v2321_v46, %s1841_s22 }
0x144a   :  { %v1222_v44 = vpop.permute.xlu0 %1221 }
0x144b   :  { %v1224_v47 = vsub.f32 %v2335_v54, %v1222_v44 }
0x144d   :  { %1226 = vrot.lane.b32.xlu2 %v1224_v47, %s1843_s8 }
0x146f   :  { %v1297_v48 = vpop.permute.xlu1 %1296 }
0x1470   :  { %v1299_v49 = vmul.f32 %v1297_v48, %v1276_v1 }
0x1472   :  { %1301 = vrot.lane.b32.xlu0 %v1299_v49, %s1843_s8 }
0x1477   :  { %v1316_v53 = vpop.permute.xlu1 %1315 }
0x147a   :  { %1305 = vrot.lane.b32.xlu0 %v2335_v54, %s1841_s22 }
0x14a7   :  { %v1227_v50 = vpop.permute.xlu2 %1226 }
0x14a8   :  { %v1229_v51 = vmul.f32 %v1227_v50, %v1206_v32 }
0x14aa   :  { %1231 = vrot.lane.b32.xlu2 %v1229_v51, %s1843_s8 }
0x14e4   :  { %v1302_v28 = vpop.permute.xlu0 %1301 }
0x14e5   :  { %v1304_v52 = vadd.f32 %v1771_v38, %v1302_v28 }
0x14e7   :  { %v1318_v55 = vsub.f32 %v1304_v52, %v1316_v53 }
0x14e9   :  { %1320 = vrot.lane.b32.xlu1 %v1318_v55, %s1841_s22 }
0x14ec   :  { %v1306_v59 = vpop.permute.xlu0 %1305 }
0x1504   :  { %v1232_v56 = vpop.permute.xlu2 %1231 }
0x1505   :  { %v1234_v57 = vadd.f32 %v1773_v41, %v1232_v56 }
0x1507   :  { %v1308_v42 = vsub.f32 %v1234_v57, %v1306_v59 }
0x1509   :  { %1310 = vrot.lane.b32.xlu2 %v1308_v42, %s1841_s22 }
0x155b   :  { %v1321_v36 = vpop.permute.xlu1 %1320 }
0x155c   :  { %v1323_v62 = vmul.f32 %v1663_v60, %v1321_v36 }
0x155e   :  { %v2369_v63 = vadd.f32 %v1323_v62, %v2321_v46  ;;  %v1497_v46 = vld [vmem:[%s2470_s1 + $0x4] sm:$0xf] }
0x1560   :  { %1328 = vst.msk [vmem:[#allocation5 + $0x4] sm:$0xf] %vm311_vm10, %v2369_v63  ;;  %1671 = vmatmul.msk.f32.vlgmr.msrb.gmra.mxu3 %vm57_vm0, %v2369_v63 }
0x1563   :  { %v1311_v0 = vpop.permute.xlu2 %1310 }
0x1564   :  { %v1313_v2 = vmul.f32 %v1662_v45, %v1311_v0 }
0x1566   :  { %v2379_v4 = vadd.f32 %v1313_v2, %v2335_v54  ;;  %v1502_v54 = vld [vmem:[%s2470_s1 + $0x18] sm:$0xf] }
0x1567   :  { %v1513_v10 = vld [vmem:[#allocation5 + $0x4] sm:$0xf] }
0x1568   :  { %1326 = vst.msk [vmem:[#allocation4 + $0x18] sm:$0xf] %vm311_vm10, %v2379_v4  ;;  %1669 = vmatmul.msk.f32.vlgmr.msrb.gmra.mxu2 %vm57_vm0, %v2379_v4  ;;  %v1521_v11 = vadd.f32 %v1513_v10, %v1505_v7 }
0x156a   :  { %v1529_v13 = vmul.f32 %v1521_v11, %v1497_v46 }
0x156c   :  { %1537 = vst.msk [vmem:[#allocation6 + $0x4] sm:$0xf] %vm311_vm10, %v1529_v13 }
0x156f   :  { %v1510_v14 = vld [vmem:[#allocation4 + $0x18] sm:$0xf] }
0x1570   :  { %v1526_v17 = vadd.f32 %v1518_v15, %v1510_v14 }
0x1572   :  { %v1534_v18 = vmul.f32 %v1526_v17, %v1502_v54  ;;  %v1332_v17 = vld [vmem:[%s2470_s1] sm:$0xf] }
0x1574   :  { %1542 = vst.msk [vmem:[#allocation6 + $0x18] sm:$0xf] %vm311_vm10, %v1534_v18 }
0x15e3   :  { %v1423_v20 = vpop.f32.mrf.mxu3 }
0x15e4   :  { %v1446_v58 = vadd.f32 %v1423_v20, %v2058_v25  ;;  %v1426_v5 = vadd.f32 %v1423_v20, %v1330_v3 }
0x15e6   :  { %1448 = vrot.lane.b32.xlu0 %v1446_v58, %s1841_s22  ;;  %v1672_v8 = vmul.f32 -1.442695, %v1426_v5 }
0x15e8   :  { %1774 = vpow2.f32 %v1672_v8  ;;  %v1556_v8 = vld [vmem:[%s2479_s10 + $0x38] sm:$0xff] }
0x15e9   :  { %1573 = vmatpush.msrb.mxu0 %v1556_v8 }
0x15eb   :  { %v1353_v21 = vpop.f32.mrf.mxu2 }
0x15ec   :  { %v1376_v1 = vadd.f32 %v1353_v21, %v2069_v34  ;;  %v1356_v24 = vadd.f32 %v1353_v21, %v1329_v61  ;;  %v1504_v21 = vld [vmem:[#allocation4] sm:$0xf] }
0x15ee   :  { %1378 = vrot.lane.b32.xlu1 %v1376_v1, %s1841_s22  ;;  %v1670_v23 = vmul.f32 -1.442695, %v1356_v24  ;;  %v1775_v27 = vpop.eup %1774 }
0x15ef   :  { %v1430_v6 = vadd.f32 1.0, %v1775_v27  ;;  %v1552_v27 = vld [vmem:[%s2479_s10 + $0x18] sm:$0xff] }
0x15f0   :  { %1776 = vpow2.f32 %v1670_v23  ;;  %v1553_v23 = vld [vmem:[%s2479_s10 + $0x20] sm:$0xff] }
0x15f1   :  { %1778 = vrcp.f32 %v1430_v6  ;;  %v1442_v26 = vand.u32 2147483648, %v1430_v6  ;;  %vm1436_vm5 = vweird.f32 %v1430_v6  ;;  %v1440_v33 = vand.u32 2147483647, %v1430_v6 }
0x15f3   :  { %v1443_v38 = vor.u32 1.1754944e-38, %v1442_v26  ;;  %vm1441_vm7 = vcmp.eq.f32.partialorder %v1440_v33, 8.507059e+37  ;;  %v1549_v26 = vld [vmem:[%s2479_s10] sm:$0xff] }
0x15f6   :  { %v1777_v19 = vpop.eup %1776 }
0x15f7   :  { %v1360_v25 = vadd.f32 1.0, %v1777_v19  ;;  %v1779_v12 = vpop.eup %1778  ;;  %v1550_v19 = vld [vmem:[%s2479_s10 + $0x8] sm:$0xff] }
0x15f8   :  { %v1432_v16 = vmul.f32 %v1779_v12, %v1430_v6  ;;  %vm1437_vm4 = vweird.f32 %v1779_v12  ;;  %v1551_v6 = vld [vmem:[%s2479_s10 + $0x10] sm:$0xff] }
0x15f9   :  { %1780 = vrcp.f32 %v1360_v25  ;;  %vm1438_vm6 = vmor %vm1436_vm5, %vm1437_vm4  ;;  %v1372_v9 = vand.u32 2147483648, %v1360_v25  ;;  %vm1366_vm8 = vweird.f32 %v1360_v25  ;;  %v1370_v44 = vand.u32 2147483647, %v1360_v25 }
0x15fa   :  { %v1433_v29 = vsub.f32 1.0, %v1432_v16 }
0x15fb   :  { %v1373_v48 = vor.u32 1.1754944e-38, %v1372_v9  ;;  %vm1371_vm11 = vcmp.eq.f32.partialorder %v1370_v44, 8.507059e+37 }
0x15fc   :  { %v1434_v30 = vmul.f32 %v1779_v12, %v1433_v29 }
0x15fe   :  { %v1435_v31 = vadd.f32 %v1779_v12, %v1434_v30 }
0x15ff   :  { %v1781_v34 = vpop.eup %1780 }
0x1600   :  { %v1362_v22 = vmul.f32 %v1781_v34, %v1360_v25  ;;  %v1439_v35 = vsel %vm1438_vm6, %v1779_v12, %v1435_v31  ;;  %vm1367_vm1 = vweird.f32 %v1781_v34  ;;  %v1668_v25 = vld [vmem:[%s2470_s1 + $0x1c] sm:$0xf] }
0x1601   :  { %v1444_v40 = vsel %vm1441_vm7, %v1443_v38, %v1439_v35  ;;  %vm1368_vm9 = vmor %vm1366_vm8, %vm1367_vm1  ;;  %v1689_v35 = vld [vmem:[%s2480_s11] ss:$0 sm:$0xff] }
0x1602   :  { %v1363_v32 = vsub.f32 1.0, %v1362_v22  ;;  %v1503_v22 = vld [vmem:[%s2470_s1 + $0x1c] sm:$0xf] }
0x1604   :  { %v1364_v37 = vmul.f32 %v1781_v34, %v1363_v32 }
0x1606   :  { %v1365_v43 = vadd.f32 %v1781_v34, %v1364_v37 }
0x1608   :  { %v1369_v47 = vsel %vm1368_vm9, %v1781_v34, %v1365_v43  ;;  %v1519_v34 = vld [vmem:[#allocation5 + $0x1c] sm:$0xf] }
0x1609   :  { %v1374_v50 = vsel %vm1371_vm11, %v1373_v48, %v1369_v47 }
0x1658   :  { %v1449_v39 = vpop.permute.xlu0 %1448 }
0x1659   :  { %v1451_v41 = vmul.f32 %v1449_v39, %v1444_v40 }
0x165b   :  { %1453 = vrot.lane.b32.xlu2 %v1451_v41, %s1841_s22 }
0x1660   :  { %v1379_v49 = vpop.permute.xlu1 %1378 }
0x1661   :  { %v1381_v51 = vmul.f32 %v1379_v49, %v1374_v50 }
0x1663   :  { %1383 = vrot.lane.b32.xlu0 %v1381_v51, %s1841_s22 }
0x16b5   :  { %v1454_v28 = vpop.permute.xlu2 %1453 }
0x16b6   :  { %v1456_v52 = vadd.f32 %v1454_v28, %v1330_v3  ;;  %v1496_v3 = vld [vmem:[%s2470_s1] sm:$0xf]  ;;  %s1593_s1 = sshll.u32 %s2481_s12, 4  ;;  %s1594_s1 = int_to_ptr.hbm [resolvable:$true] %s1593_s1 }
0x16b8   :  { %1782 = vtanh.f32 %v1456_v52 }
0x16be   :  { %v1783_v53 = vpop.eup %1782 }
0x16bf   :  { %1459 = vrot.lane.b32.xlu1 %v1783_v53, %s1841_s22 }
0x16d5   :  { %v1384_v55 = vpop.permute.xlu0 %1383 }
0x16d6   :  { %v1386_v56 = vadd.f32 %v1384_v55, %v1329_v61  ;;  %v1555_v61 = vld [vmem:[%s2479_s10 + $0x30] sm:$0xff] }
0x16d7   :  { %1574 = vmatpush.msrb.mxu0 %v1555_v61 }
0x16d8   :  { %1784 = vtanh.f32 %v1386_v56 }
0x16de   :  { %v1785_v57 = vpop.eup %1784 }
0x16df   :  { %1389 = vrot.lane.b32.xlu2 %v1785_v57, %s1841_s22 }
0x1731   :  { %v1460_v59 = vpop.permute.xlu1 %1459 }
0x1732   :  { %v1462_v42 = vsub.f32 %v2369_v63, %v1460_v59 }
0x1734   :  { %1464 = vrot.lane.b32.xlu0 %v1462_v42, %s1843_s8 }
0x1739   :  { %v1390_v60 = vpop.permute.xlu2 %1389 }
0x173a   :  { %v1392_v36 = vsub.f32 %v2379_v4, %v1390_v60 }
0x173c   :  { %1483 = vrot.lane.b32.xlu0 %v2369_v63, %s1841_s22  ;;  %1394 = vrot.lane.b32.xlu1 %v1392_v36, %s1843_s8 }
0x17a6   :  { %v1465_v62 = vpop.permute.xlu0 %1464 }
0x17a7   :  { %v1467_v45 = vmul.f32 %v1465_v62, %v1444_v40 }
0x17a9   :  { %1469 = vrot.lane.b32.xlu2 %v1467_v45, %s1843_s8 }
0x17ae   :  { %v1395_v0 = vpop.permute.xlu1 %1394  ;;  %v1484_v10 = vpop.permute.xlu0 %1483 }
0x17af   :  { %v1397_v2 = vmul.f32 %v1395_v0, %v1374_v50 }
0x17b1   :  { %1473 = vrot.lane.b32.xlu2 %v2379_v4, %s1841_s22  ;;  %1399 = vrot.lane.b32.xlu1 %v1397_v2, %s1843_s8 }
0x1803   :  { %v1470_v46 = vpop.permute.xlu2 %1469 }
0x1804   :  { %v1472_v7 = vadd.f32 %v1783_v53, %v1470_v46 }
0x1806   :  { %v1486_v11 = vsub.f32 %v1472_v7, %v1484_v10 }
0x1808   :  { %1488 = vrot.lane.b32.xlu0 %v1486_v11, %s1841_s22 }
0x180b   :  { %v1474_v14 = vpop.permute.xlu2 %1473 }
0x1823   :  { %v1400_v13 = vpop.permute.xlu1 %1399 }
0x1824   :  { %v1402_v54 = vadd.f32 %v1785_v57, %v1400_v13 }
0x1826   :  { %v1476_v15 = vsub.f32 %v1402_v54, %v1474_v14 }
0x1828   :  { %1478 = vrot.lane.b32.xlu1 %v1476_v15, %s1841_s22 }
0x187a   :  { %v1489_v18 = vpop.permute.xlu0 %1488 }
0x187b   :  { %v1491_v20 = vmul.f32 %v1489_v18, %v1332_v17 }
0x187d   :  { %v1492_v58 = vadd.f32 %v1491_v20, %v2369_v63  ;;  %v1554_v63 = vld [vmem:[%s2479_s10 + $0x28] sm:$0xff] }
0x187e   :  { %1575 = vmatpush.msrb.mxu0 %v1554_v63 }
0x187f   :  { %1495 = vst.msk [vmem:[#allocation5] sm:$0xf] %vm311_vm10, %v1492_v58  ;;  %1545 = vrot.lane.b32.xlu2 %v1492_v58, %s1843_s8 }
0x1880   :  { %1576 = vmatpush.msrb.mxu0 %v1553_v23 }
0x1882   :  { %1577 = vmatpush.msrb.mxu0 %v1552_v27 }
0x1884   :  { %1578 = vmatpush.msrb.mxu0 %v1551_v6 }
0x1886   :  { %v1512_v1 = vld [vmem:[#allocation5] sm:$0xf]  ;;  %1579 = vmatpush.msrb.mxu0 %v1550_v19 }
0x1887   :  { %v1520_v5 = vadd.f32 %v1512_v1, %v1504_v21 }
0x1888   :  { %1580 = vmatpush.msrb.mxu0 %v1549_v26 }
0x1889   :  { %v1528_v24 = vmul.f32 %v1520_v5, %v1496_v3 }
0x188b   :  { %1536 = vst.msk [vmem:[#allocation6] sm:$0xf] %vm311_vm10, %v1528_v24 }
0x189a   :  { %v1479_v12 = vpop.permute.xlu1 %1478 }
0x189b   :  { %v1481_v16 = vmul.f32 %v1668_v25, %v1479_v12 }
0x189d   :  { %v1482_v29 = vadd.f32 %v1481_v16, %v2379_v4 }
0x189f   :  { %1494 = vst.msk [vmem:[#allocation4 + $0x1c] sm:$0xf] %vm311_vm10, %v1482_v29 }
0x18a6   :  { %v1511_v30 = vld [vmem:[#allocation4 + $0x1c] sm:$0xf] }
0x18a7   :  { %v1527_v31 = vadd.f32 %v1519_v34, %v1511_v30 }
0x18a9   :  { %v1535_v32 = vmul.f32 %v1527_v31, %v1503_v22 }
0x18ab   :  { %1543 = vst.msk [vmem:[#allocation6 + $0x1c] sm:$0xf] %vm311_vm10, %v1535_v32 }
0x18ac   :  { %1599 = dma.vmem_to_hbm [thread:$0]  %s1592_s6, 512, %s1594_s1, [#allocation7], %s1841_s22, %s1841_s22, %s1845_s0  }
0x18d9   :  { %v1546_v33 = vpop.permute.xlu2 %1545 }
0x18da   :  { %v1548_v4 = vsel %vm57_vm0, %v1482_v29, %v1546_v33 }
0x18db   :  { %1673 = vmatmul.msk.f32.vlgmr.msrb.gmra.mxu0 %vm1561_vm12, %v1548_v4 }
0x1958   :  { %v1582_v37 = vpop.f32.mrf.mxu0 }
0x1959   :  { %v1583_v38 = vadd.f32 %v1689_v35, %v1582_v37 }
0x195b   :  { %1786 = vtanh.f32 %v1583_v38 }
0x1961   :  { %v1787_v39 = vpop.eup %1786 }
0x1962   :  { %1586 = vst.msk [vmem:[#allocation8] sm:$0xf] %vm311_vm10, %v1787_v39 }
0x1963   :  { %1610 = dma.vmem_to_hbm [thread:$0]  %s1606_s30, 64, %s1608_s15, [#allocation9]  }
0x1964   :  { %1836 = dma.done.wait [#allocation7], 512  }
0x1965   :  { %1837 = vsyncadd [#allocation7], 4294966784 }
0x1966   :  { %1838 = dma.done.wait [#allocation9], 64  }
0x1967   :  { %1839 = vsyncadd [#allocation9], 4294967232 }
0x1968   :  { %1619 = vsyncpa [#allocation7], 1 }
0x1969   :  { %1620 = vsyncpa [#allocation9], 1 }

</bundles_post_ra>
